<compile_context>
chip_gen: v5e
topology: v5e:2x2
jax: 0.10.0
libtpu: 0.0.40
codegen_flags: <defaults>
</compile_context>

<pallas_src>
import math
import functools

import jax
import jax.numpy as jnp
from jax.experimental import pallas as pl
from jax.experimental.pallas import tpu as pltpu  # noqa: F401  (TPU backend / memory spaces)

# ---- small synthetic BERT config (bert-base scaled down) ----
VOCAB = 100
VOCAB_PAD = 128          # pad vocab to one full lane tile for the one-hot MXU gather
MAX_POS = 32
TYPE_VOCAB = 2
HIDDEN = 32
N_HEADS = 4
HEAD_DIM = HIDDEN // N_HEADS
INTERMEDIATE = 64
N_LAYERS = 2
LN_EPS = 1e-12           # BertLayerNorm eps


# --------------------------- in-kernel helpers --------------------------------

def _layernorm(x, g, b):
    mean = jnp.mean(x, axis=-1, keepdims=True)
    c = x - mean
    var = jnp.mean(c * c, axis=-1, keepdims=True)
    return c * jax.lax.rsqrt(var + LN_EPS) * g + b


def _gelu(x):
    # TODO(synk): HF BERT uses exact erf-GELU; tanh approximation kept for a guaranteed
    # Mosaic-safe elementwise lowering (EUP tanh). ~1e-3-level deviation from reference.
    c = math.sqrt(2.0 / math.pi)
    x3 = x * x * x
    return 0.5 * x * (1.0 + jnp.tanh(c * (x + 0.044715 * x3)))


# --------------------------- fused Pallas kernel -------------------------------

def _bert_kernel(ids_ref, mask_ref, word_ref, pt_ref, eg_ref, eb_ref,
                 wq_ref, wk_ref, wv_ref, bq_ref, bk_ref, bv_ref,
                 wo_ref, bo_ref, ln1g_ref, ln1b_ref,
                 w1_ref, b1_ref, w2_ref, b2_ref, ln2g_ref, ln2b_ref,
                 out_ref, *, batch, seq, n_layers):
    """Whole BERT forward (embeddings + encoder), everything VMEM/register resident."""
    scale = 1.0 / math.sqrt(HEAD_DIM)
    m_rows = batch * seq

    # ---- embedding lookup as one-hot MXU matmul (no XLA gather, no HBM emb slab) ----
    ids = ids_ref[...]                                                  # (B, S) int32
    iota_v = jax.lax.broadcasted_iota(jnp.int32, (batch, seq, VOCAB_PAD), 2)
    onehot = (ids[:, :, None] == iota_v).astype(jnp.float32).reshape(m_rows, VOCAB_PAD)
    word = jnp.dot(onehot, word_ref[...], preferred_element_type=jnp.float32)  # (M, H)

    # position + token-type(=0) embeddings, pre-summed to (S, H) outside; broadcast over B
    pos_type = jnp.broadcast_to(pt_ref[...][None, :, :],
                                (batch, seq, HIDDEN)).reshape(m_rows, HIDDEN)

    h = _layernorm(word + pos_type, eg_ref[...], eb_ref[...])           # (M, H)

    # ---- additive attention mask built in-kernel ----
    mask_bias = (1.0 - mask_ref[...].astype(jnp.float32)) * -1e9        # (B, S)

    for l in range(n_layers):                                           # static unroll
        # lane-aligned Q/K/V projections (three (H,H) matmuls; MXU is idle so no fusion win)
        q = jnp.dot(h, wq_ref[l], preferred_element_type=jnp.float32) + bq_ref[l]
        k = jnp.dot(h, wk_ref[l], preferred_element_type=jnp.float32) + bk_ref[l]
        v = jnp.dot(h, wv_ref[l], preferred_element_type=jnp.float32) + bv_ref[l]

        # ---- scaled dot-product attention; context stays in registers ----
        ctx_rows = []
        for b in range(batch):
            r0 = b * seq
            bias_b = mask_bias[b:b + 1, :]                               # (1, S) over keys
            heads = []
            for hh in range(N_HEADS):
                c0 = hh * HEAD_DIM
                q_bh = q[r0:r0 + seq, c0:c0 + HEAD_DIM]                  # (S, d)
                k_bh = k[r0:r0 + seq, c0:c0 + HEAD_DIM]
                v_bh = v[r0:r0 + seq, c0:c0 + HEAD_DIM]
                # contract last dims (trans_b MXU path) — no materialized transpose
                s = jax.lax.dot_general(q_bh, k_bh, (((1,), (1,)), ((), ())),
                                        preferred_element_type=jnp.float32) * scale
                s = s + bias_b
                # No running-max subtraction: scores are LayerNorm-bounded & 1/sqrt(d)
                # scaled; masked logits (-1e9) underflow exp() to exactly 0.  Requires
                # that no query row is fully masked (holds for this config).
                p = jnp.exp(s)
                p = p * pl.reciprocal(jnp.sum(p, axis=-1, keepdims=True), approx=True)
                heads.append(jnp.dot(p, v_bh, preferred_element_type=jnp.float32))
            ctx_rows.append(jnp.concatenate(heads, axis=-1))             # (S, H) lane-dense
        ctx = jnp.concatenate(ctx_rows, axis=0)                          # (M, H) in registers

        # ---- output projection fused with residual add + LayerNorm ----
        attn_out = jnp.dot(ctx, wo_ref[l], preferred_element_type=jnp.float32) + bo_ref[l]
        h = _layernorm(attn_out + h, ln1g_ref[l], ln1b_ref[l])

        # ---- feed-forward (GELU) fused with residual add + LayerNorm ----
        ff = _gelu(jnp.dot(h, w1_ref[l], preferred_element_type=jnp.float32) + b1_ref[l])
        ff = jnp.dot(ff, w2_ref[l], preferred_element_type=jnp.float32) + b2_ref[l]
        h = _layernorm(ff + h, ln2g_ref[l], ln2b_ref[l])

    # ---- single store: only the CLS rows go back to HBM ----
    cls = jnp.concatenate([h[b * seq:b * seq + 1, :] for b in range(batch)], axis=0)
    out_ref[...] = cls


# ----------------------------- model glue --------------------------------------

def init_params(key):
    def nrm(k, shape, scale=0.02):
        return scale * jax.random.normal(k, shape, dtype=jnp.float32)

    keys = jax.random.split(key, 3 + N_LAYERS)
    params = {
        "word_emb": nrm(keys[0], (VOCAB, HIDDEN)),
        "pos_emb": nrm(keys[1], (MAX_POS, HIDDEN)),
        "type_emb": nrm(keys[2], (TYPE_VOCAB, HIDDEN)),
        "emb_ln_g": jnp.ones((HIDDEN,), jnp.float32),
        "emb_ln_b": jnp.zeros((HIDDEN,), jnp.float32),
        "layers": [],
    }
    for l in range(N_LAYERS):
        lk = jax.random.split(keys[3 + l], 6)
        layer = {
            "wq": nrm(lk[0], (HIDDEN, HIDDEN)), "bq": jnp.zeros((HIDDEN,), jnp.float32),
            "wk": nrm(lk[1], (HIDDEN, HIDDEN)), "bk": jnp.zeros((HIDDEN,), jnp.float32),
            "wv": nrm(lk[2], (HIDDEN, HIDDEN)), "bv": jnp.zeros((HIDDEN,), jnp.float32),
            "wo": nrm(lk[3], (HIDDEN, HIDDEN)), "bo": jnp.zeros((HIDDEN,), jnp.float32),
            "ln1_g": jnp.ones((HIDDEN,), jnp.float32), "ln1_b": jnp.zeros((HIDDEN,), jnp.float32),
            "w1": nrm(lk[4], (HIDDEN, INTERMEDIATE)), "b1": jnp.zeros((INTERMEDIATE,), jnp.float32),
            "w2": nrm(lk[5], (INTERMEDIATE, HIDDEN)), "b2": jnp.zeros((HIDDEN,), jnp.float32),
            "ln2_g": jnp.ones((HIDDEN,), jnp.float32), "ln2_b": jnp.zeros((HIDDEN,), jnp.float32),
        }
        params["layers"].append(layer)
    return params


def pack_params(params, seq_len):
    """One-time (outside jit / outside the per-call path) weight packing."""
    layers = params["layers"]
    L = len(layers)

    def stk(name, reshape=None):
        a = jnp.stack([layers[l][name] for l in range(L)], axis=0)
        return a.reshape(reshape) if reshape is not None else a

    # pad vocab to one full lane tile so the in-kernel one-hot gather is lane-aligned
    word_pad = jnp.zeros((VOCAB_PAD, HIDDEN), jnp.float32).at[:VOCAB, :].set(
        params["word_emb"].astype(jnp.float32))
    # TODO(synk): token_type_ids hardcoded to all-zero, matching the reference usage.
    pos_type = (params["pos_emb"][:seq_len]
                + params["type_emb"][0][None, :]).astype(jnp.float32)        # (S, H)

    packed = {
        "word_emb": word_pad,
        "pos_type": pos_type,
        "emb_ln_g": params["emb_ln_g"].reshape(1, HIDDEN),
        "emb_ln_b": params["emb_ln_b"].reshape(1, HIDDEN),
        "wq": stk("wq"), "wk": stk("wk"), "wv": stk("wv"),
        "bq": stk("bq", (L, 1, HIDDEN)), "bk": stk("bk", (L, 1, HIDDEN)),
        "bv": stk("bv", (L, 1, HIDDEN)),
        "wo": stk("wo"), "bo": stk("bo", (L, 1, HIDDEN)),
        "ln1_g": stk("ln1_g", (L, 1, HIDDEN)), "ln1_b": stk("ln1_b", (L, 1, HIDDEN)),
        "w1": stk("w1"), "b1": stk("b1", (L, 1, INTERMEDIATE)),
        "w2": stk("w2"), "b2": stk("b2", (L, 1, HIDDEN)),
        "ln2_g": stk("ln2_g", (L, 1, HIDDEN)), "ln2_b": stk("ln2_b", (L, 1, HIDDEN)),
    }
    return packed


def bert_forward(packed, input_ids, attention_mask):
    """Returns last_hidden_state[:, 0, :] — same as BertEmbeddingNet.forward."""
    B, S = input_ids.shape
    L = packed["wq"].shape[0]

    kernel = functools.partial(_bert_kernel, batch=B, seq=S, n_layers=L)

    # Single grid-less pallas_call: every operand is a full VMEM-resident block
    # (params + activations ~100 KiB, far under the 64/128 MiB VMEM budgets).
    out = pl.pallas_call(
        kernel,
        out_shape=jax.ShapeDtypeStruct((B, HIDDEN), jnp.float32),
    )(input_ids.astype(jnp.int32), attention_mask.astype(jnp.int32),
      packed["word_emb"], packed["pos_type"], packed["emb_ln_g"], packed["emb_ln_b"],
      packed["wq"], packed["wk"], packed["wv"],
      packed["bq"], packed["bk"], packed["bv"],
      packed["wo"], packed["bo"], packed["ln1_g"], packed["ln1_b"],
      packed["w1"], packed["b1"], packed["w2"], packed["b2"],
      packed["ln2_g"], packed["ln2_b"])
    return out


if __name__ == "__main__":
    key = jax.random.PRNGKey(0)
    pkey, ikey = jax.random.split(key)
    params = init_params(pkey)

    B, S = 2, 8
    input_ids = jax.random.randint(ikey, (B, S), 0, VOCAB, dtype=jnp.int32)
    attention_mask = jnp.array([[1, 1, 1, 1, 1, 1, 1, 1],
                                [1, 1, 1, 1, 1, 1, 0, 0]], dtype=jnp.int32)

    # one-time packing, outside the jitted per-call path
    packed = jax.block_until_ready(pack_params(params, seq_len=S))

    fwd = jax.jit(bert_forward)
    out = fwd(packed, input_ids, attention_mask)
    out = jax.block_until_ready(out)
    assert out.shape == (B, HIDDEN) and out.dtype == jnp.float32
    assert bool(jnp.all(jnp.isfinite(out)))
    print("KERNEL_OK")
</pallas_src>

<mosaic_0001>
module attributes {stable_mosaic.version = 11 : i64} {
  func.func @_bert_kernel(%arg0: memref<2x8xi32, #tpu.memory_space<vmem>>, %arg1: memref<2x8xi32, #tpu.memory_space<vmem>>, %arg2: memref<128x32xf32, #tpu.memory_space<vmem>>, %arg3: memref<8x32xf32, #tpu.memory_space<vmem>>, %arg4: memref<1x32xf32, #tpu.memory_space<vmem>>, %arg5: memref<1x32xf32, #tpu.memory_space<vmem>>, %arg6: memref<2x32x32xf32, #tpu.memory_space<vmem>>, %arg7: memref<2x32x32xf32, #tpu.memory_space<vmem>>, %arg8: memref<2x32x32xf32, #tpu.memory_space<vmem>>, %arg9: memref<2x1x32xf32, #tpu.memory_space<vmem>>, %arg10: memref<2x1x32xf32, #tpu.memory_space<vmem>>, %arg11: memref<2x1x32xf32, #tpu.memory_space<vmem>>, %arg12: memref<2x32x32xf32, #tpu.memory_space<vmem>>, %arg13: memref<2x1x32xf32, #tpu.memory_space<vmem>>, %arg14: memref<2x1x32xf32, #tpu.memory_space<vmem>>, %arg15: memref<2x1x32xf32, #tpu.memory_space<vmem>>, %arg16: memref<2x32x64xf32, #tpu.memory_space<vmem>>, %arg17: memref<2x1x64xf32, #tpu.memory_space<vmem>>, %arg18: memref<2x64x32xf32, #tpu.memory_space<vmem>>, %arg19: memref<2x1x32xf32, #tpu.memory_space<vmem>>, %arg20: memref<2x1x32xf32, #tpu.memory_space<vmem>>, %arg21: memref<2x1x32xf32, #tpu.memory_space<vmem>>, %arg22: memref<2x32xf32, #tpu.memory_space<vmem>>) attributes {dimension_semantics = [], scalar_prefetch = 0 : i64, scratch_operands = 0 : i64, tpu.core_type = #tpu.core_type<tc>} {
    %c0 = arith.constant 0 : index
    %c0_0 = arith.constant 0 : index
    %0 = vector.load %arg0[%c0, %c0_0] : memref<2x8xi32, #tpu.memory_space<vmem>>, vector<2x8xi32>
    %1 = tpu.iota {dimensions = array<i32: 2>} : vector<2x8x128xi32>
    %2 = vector.shape_cast %0 : vector<2x8xi32> to vector<2x8x1xi32>
    %3 = vector.broadcast %2 : vector<2x8x1xi32> to vector<2x8x128xi32>
    %4 = arith.cmpi eq, %3, %1 : vector<2x8x128xi32>
    %5 = arith.extui %4 : vector<2x8x128xi1> to vector<2x8x128xi32>
    %6 = arith.sitofp %5 : vector<2x8x128xi32> to vector<2x8x128xf32>
    %7 = vector.shape_cast %6 : vector<2x8x128xf32> to vector<16x128xf32>
    %c0_1 = arith.constant 0 : index
    %c0_2 = arith.constant 0 : index
    %8 = vector.load %arg2[%c0_1, %c0_2] : memref<128x32xf32, #tpu.memory_space<vmem>>, vector<128x32xf32>
    %cst = arith.constant dense<0.000000e+00> : vector<16x32xf32>
    %9 = tpu.matmul %7, %8, %cst {dimension_numbers = #tpu.dot_dimension_numbers<[1], [0], [0], [1], [0, 0, 1, 1], [], []>} : vector<16x128xf32>, vector<128x32xf32>, vector<16x32xf32> -> vector<16x32xf32>
    %c0_3 = arith.constant 0 : index
    %c0_4 = arith.constant 0 : index
    %10 = vector.load %arg3[%c0_3, %c0_4] : memref<8x32xf32, #tpu.memory_space<vmem>>, vector<8x32xf32>
    %11 = vector.shape_cast %10 : vector<8x32xf32> to vector<1x8x32xf32>
    %12 = vector.shape_cast %11 : vector<1x8x32xf32> to vector<1x8x32xf32>
    %13 = vector.broadcast %12 : vector<1x8x32xf32> to vector<2x8x32xf32>
    %14 = vector.shape_cast %13 : vector<2x8x32xf32> to vector<16x32xf32>
    %15 = arith.addf %9, %14 : vector<16x32xf32>
    %c0_5 = arith.constant 0 : index
    %c0_6 = arith.constant 0 : index
    %16 = vector.load %arg4[%c0_5, %c0_6] : memref<1x32xf32, #tpu.memory_space<vmem>>, vector<1x32xf32>
    %c0_7 = arith.constant 0 : index
    %c0_8 = arith.constant 0 : index
    %17 = vector.load %arg5[%c0_7, %c0_8] : memref<1x32xf32, #tpu.memory_space<vmem>>, vector<1x32xf32>
    %cst_9 = arith.constant dense<0.000000e+00> : vector<16xf32>
    %18 = vector.multi_reduction <add>, %15, %cst_9 [1] : vector<16x32xf32> to vector<16xf32>
    %19 = vector.shape_cast %18 : vector<16xf32> to vector<16x1xf32>
    %cst_10 = arith.constant 3.200000e+01 : f32
    %20 = vector.broadcast %cst_10 : f32 to vector<16x1xf32>
    %21 = arith.divf %19, %20 : vector<16x1xf32>
    %22 = vector.broadcast %21 : vector<16x1xf32> to vector<16x32xf32>
    %23 = arith.subf %15, %22 : vector<16x32xf32>
    %24 = arith.mulf %23, %23 : vector<16x32xf32>
    %cst_11 = arith.constant dense<0.000000e+00> : vector<16xf32>
    %25 = vector.multi_reduction <add>, %24, %cst_11 [1] : vector<16x32xf32> to vector<16xf32>
    %26 = vector.shape_cast %25 : vector<16xf32> to vector<16x1xf32>
    %cst_12 = arith.constant 3.200000e+01 : f32
    %27 = vector.broadcast %cst_12 : f32 to vector<16x1xf32>
    %28 = arith.divf %26, %27 : vector<16x1xf32>
    %cst_13 = arith.constant 9.99999996E-13 : f32
    %29 = vector.broadcast %cst_13 : f32 to vector<16x1xf32>
    %30 = arith.addf %28, %29 : vector<16x1xf32>
    %31 = math.rsqrt %30 : vector<16x1xf32>
    %32 = vector.broadcast %31 : vector<16x1xf32> to vector<16x32xf32>
    %33 = arith.mulf %23, %32 : vector<16x32xf32>
    %34 = vector.broadcast %16 : vector<1x32xf32> to vector<16x32xf32>
    %35 = arith.mulf %33, %34 : vector<16x32xf32>
    %36 = vector.broadcast %17 : vector<1x32xf32> to vector<16x32xf32>
    %37 = arith.addf %35, %36 : vector<16x32xf32>
    %c0_14 = arith.constant 0 : index
    %c0_15 = arith.constant 0 : index
    %38 = vector.load %arg1[%c0_14, %c0_15] : memref<2x8xi32, #tpu.memory_space<vmem>>, vector<2x8xi32>
    %39 = arith.sitofp %38 : vector<2x8xi32> to vector<2x8xf32>
    %cst_16 = arith.constant 1.000000e+00 : f32
    %40 = vector.broadcast %cst_16 : f32 to vector<2x8xf32>
    %41 = arith.subf %40, %39 : vector<2x8xf32>
    %cst_17 = arith.constant -1.000000e+09 : f32
    %42 = vector.broadcast %cst_17 : f32 to vector<2x8xf32>
    %43 = arith.mulf %41, %42 : vector<2x8xf32>
    %c0_18 = arith.constant 0 : index
    %c0_19 = arith.constant 0 : index
    %c0_20 = arith.constant 0 : index
    %44 = vector.load %arg6[%c0_18, %c0_19, %c0_20] : memref<2x32x32xf32, #tpu.memory_space<vmem>>, vector<1x32x32xf32>
    %45 = vector.shape_cast %44 : vector<1x32x32xf32> to vector<32x32xf32>
    %cst_21 = arith.constant dense<0.000000e+00> : vector<16x32xf32>
    %46 = tpu.matmul %37, %45, %cst_21 {dimension_numbers = #tpu.dot_dimension_numbers<[1], [0], [0], [1], [0, 0, 1, 1], [], []>} : vector<16x32xf32>, vector<32x32xf32>, vector<16x32xf32> -> vector<16x32xf32>
    %c0_22 = arith.constant 0 : index
    %c0_23 = arith.constant 0 : index
    %c0_24 = arith.constant 0 : index
    %47 = vector.load %arg9[%c0_22, %c0_23, %c0_24] : memref<2x1x32xf32, #tpu.memory_space<vmem>>, vector<1x1x32xf32>
    %48 = vector.shape_cast %47 : vector<1x1x32xf32> to vector<1x32xf32>
    %49 = vector.broadcast %48 : vector<1x32xf32> to vector<16x32xf32>
    %50 = arith.addf %46, %49 : vector<16x32xf32>
    %c0_25 = arith.constant 0 : index
    %c0_26 = arith.constant 0 : index
    %c0_27 = arith.constant 0 : index
    %51 = vector.load %arg7[%c0_25, %c0_26, %c0_27] : memref<2x32x32xf32, #tpu.memory_space<vmem>>, vector<1x32x32xf32>
    %52 = vector.shape_cast %51 : vector<1x32x32xf32> to vector<32x32xf32>
    %cst_28 = arith.constant dense<0.000000e+00> : vector<16x32xf32>
    %53 = tpu.matmul %37, %52, %cst_28 {dimension_numbers = #tpu.dot_dimension_numbers<[1], [0], [0], [1], [0, 0, 1, 1], [], []>} : vector<16x32xf32>, vector<32x32xf32>, vector<16x32xf32> -> vector<16x32xf32>
    %c0_29 = arith.constant 0 : index
    %c0_30 = arith.constant 0 : index
    %c0_31 = arith.constant 0 : index
    %54 = vector.load %arg10[%c0_29, %c0_30, %c0_31] : memref<2x1x32xf32, #tpu.memory_space<vmem>>, vector<1x1x32xf32>
    %55 = vector.shape_cast %54 : vector<1x1x32xf32> to vector<1x32xf32>
    %56 = vector.broadcast %55 : vector<1x32xf32> to vector<16x32xf32>
    %57 = arith.addf %53, %56 : vector<16x32xf32>
    %c0_32 = arith.constant 0 : index
    %c0_33 = arith.constant 0 : index
    %c0_34 = arith.constant 0 : index
    %58 = vector.load %arg8[%c0_32, %c0_33, %c0_34] : memref<2x32x32xf32, #tpu.memory_space<vmem>>, vector<1x32x32xf32>
    %59 = vector.shape_cast %58 : vector<1x32x32xf32> to vector<32x32xf32>
    %cst_35 = arith.constant dense<0.000000e+00> : vector<16x32xf32>
    %60 = tpu.matmul %37, %59, %cst_35 {dimension_numbers = #tpu.dot_dimension_numbers<[1], [0], [0], [1], [0, 0, 1, 1], [], []>} : vector<16x32xf32>, vector<32x32xf32>, vector<16x32xf32> -> vector<16x32xf32>
    %c0_36 = arith.constant 0 : index
    %c0_37 = arith.constant 0 : index
    %c0_38 = arith.constant 0 : index
    %61 = vector.load %arg11[%c0_36, %c0_37, %c0_38] : memref<2x1x32xf32, #tpu.memory_space<vmem>>, vector<1x1x32xf32>
    %62 = vector.shape_cast %61 : vector<1x1x32xf32> to vector<1x32xf32>
    %63 = vector.broadcast %62 : vector<1x32xf32> to vector<16x32xf32>
    %64 = arith.addf %60, %63 : vector<16x32xf32>
    %65 = vector.extract_strided_slice %43 {offsets = [0, 0], sizes = [1, 8], strides = [1, 1]} : vector<2x8xf32> to vector<1x8xf32>
    %66 = vector.extract_strided_slice %50 {offsets = [0, 0], sizes = [8, 8], strides = [1, 1]} : vector<16x32xf32> to vector<8x8xf32>
    %67 = vector.extract_strided_slice %57 {offsets = [0, 0], sizes = [8, 8], strides = [1, 1]} : vector<16x32xf32> to vector<8x8xf32>
    %68 = vector.extract_strided_slice %64 {offsets = [0, 0], sizes = [8, 8], strides = [1, 1]} : vector<16x32xf32> to vector<8x8xf32>
    %cst_39 = arith.constant dense<0.000000e+00> : vector<8x8xf32>
    %69 = tpu.matmul %66, %67, %cst_39 {dimension_numbers = #tpu.dot_dimension_numbers<[1], [1], [0], [0], [0, 0, 1, 0], [], []>} : vector<8x8xf32>, vector<8x8xf32>, vector<8x8xf32> -> vector<8x8xf32>
    %cst_40 = arith.constant 0.353553385 : f32
    %70 = vector.broadcast %cst_40 : f32 to vector<8x8xf32>
    %71 = arith.mulf %69, %70 : vector<8x8xf32>
    %72 = vector.broadcast %65 : vector<1x8xf32> to vector<8x8xf32>
    %73 = arith.addf %71, %72 : vector<8x8xf32>
    %74 = math.exp %73 : vector<8x8xf32>
    %cst_41 = arith.constant dense<0.000000e+00> : vector<8xf32>
    %75 = vector.multi_reduction <add>, %74, %cst_41 [1] : vector<8x8xf32> to vector<8xf32>
    %76 = vector.shape_cast %75 : vector<8xf32> to vector<8x1xf32>
    %77 = tpu.reciprocal %76 {approx = true} : vector<8x1xf32> -> vector<8x1xf32>
    %78 = vector.broadcast %77 : vector<8x1xf32> to vector<8x8xf32>
    %79 = arith.mulf %74, %78 : vector<8x8xf32>
    %cst_42 = arith.constant dense<0.000000e+00> : vector<8x8xf32>
    %80 = tpu.matmul %79, %68, %cst_42 {dimension_numbers = #tpu.dot_dimension_numbers<[1], [0], [0], [1], [0, 0, 1, 1], [], []>} : vector<8x8xf32>, vector<8x8xf32>, vector<8x8xf32> -> vector<8x8xf32>
    %81 = vector.extract_strided_slice %50 {offsets = [0, 8], sizes = [8, 8], strides = [1, 1]} : vector<16x32xf32> to vector<8x8xf32>
    %82 = vector.extract_strided_slice %57 {offsets = [0, 8], sizes = [8, 8], strides = [1, 1]} : vector<16x32xf32> to vector<8x8xf32>
    %83 = vector.extract_strided_slice %64 {offsets = [0, 8], sizes = [8, 8], strides = [1, 1]} : vector<16x32xf32> to vector<8x8xf32>
    %cst_43 = arith.constant dense<0.000000e+00> : vector<8x8xf32>
    %84 = tpu.matmul %81, %82, %cst_43 {dimension_numbers = #tpu.dot_dimension_numbers<[1], [1], [0], [0], [0, 0, 1, 0], [], []>} : vector<8x8xf32>, vector<8x8xf32>, vector<8x8xf32> -> vector<8x8xf32>
    %cst_44 = arith.constant 0.353553385 : f32
    %85 = vector.broadcast %cst_44 : f32 to vector<8x8xf32>
    %86 = arith.mulf %84, %85 : vector<8x8xf32>
    %87 = vector.broadcast %65 : vector<1x8xf32> to vector<8x8xf32>
    %88 = arith.addf %86, %87 : vector<8x8xf32>
    %89 = math.exp %88 : vector<8x8xf32>
    %cst_45 = arith.constant dense<0.000000e+00> : vector<8xf32>
    %90 = vector.multi_reduction <add>, %89, %cst_45 [1] : vector<8x8xf32> to vector<8xf32>
    %91 = vector.shape_cast %90 : vector<8xf32> to vector<8x1xf32>
    %92 = tpu.reciprocal %91 {approx = true} : vector<8x1xf32> -> vector<8x1xf32>
    %93 = vector.broadcast %92 : vector<8x1xf32> to vector<8x8xf32>
    %94 = arith.mulf %89, %93 : vector<8x8xf32>
    %cst_46 = arith.constant dense<0.000000e+00> : vector<8x8xf32>
    %95 = tpu.matmul %94, %83, %cst_46 {dimension_numbers = #tpu.dot_dimension_numbers<[1], [0], [0], [1], [0, 0, 1, 1], [], []>} : vector<8x8xf32>, vector<8x8xf32>, vector<8x8xf32> -> vector<8x8xf32>
    %96 = vector.extract_strided_slice %50 {offsets = [0, 16], sizes = [8, 8], strides = [1, 1]} : vector<16x32xf32> to vector<8x8xf32>
    %97 = vector.extract_strided_slice %57 {offsets = [0, 16], sizes = [8, 8], strides = [1, 1]} : vector<16x32xf32> to vector<8x8xf32>
    %98 = vector.extract_strided_slice %64 {offsets = [0, 16], sizes = [8, 8], strides = [1, 1]} : vector<16x32xf32> to vector<8x8xf32>
    %cst_47 = arith.constant dense<0.000000e+00> : vector<8x8xf32>
    %99 = tpu.matmul %96, %97, %cst_47 {dimension_numbers = #tpu.dot_dimension_numbers<[1], [1], [0], [0], [0, 0, 1, 0], [], []>} : vector<8x8xf32>, vector<8x8xf32>, vector<8x8xf32> -> vector<8x8xf32>
    %cst_48 = arith.constant 0.353553385 : f32
    %100 = vector.broadcast %cst_48 : f32 to vector<8x8xf32>
    %101 = arith.mulf %99, %100 : vector<8x8xf32>
    %102 = vector.broadcast %65 : vector<1x8xf32> to vector<8x8xf32>
    %103 = arith.addf %101, %102 : vector<8x8xf32>
    %104 = math.exp %103 : vector<8x8xf32>
    %cst_49 = arith.constant dense<0.000000e+00> : vector<8xf32>
    %105 = vector.multi_reduction <add>, %104, %cst_49 [1] : vector<8x8xf32> to vector<8xf32>
    %106 = vector.shape_cast %105 : vector<8xf32> to vector<8x1xf32>
    %107 = tpu.reciprocal %106 {approx = true} : vector<8x1xf32> -> vector<8x1xf32>
    %108 = vector.broadcast %107 : vector<8x1xf32> to vector<8x8xf32>
    %109 = arith.mulf %104, %108 : vector<8x8xf32>
    %cst_50 = arith.constant dense<0.000000e+00> : vector<8x8xf32>
    %110 = tpu.matmul %109, %98, %cst_50 {dimension_numbers = #tpu.dot_dimension_numbers<[1], [0], [0], [1], [0, 0, 1, 1], [], []>} : vector<8x8xf32>, vector<8x8xf32>, vector<8x8xf32> -> vector<8x8xf32>
    %111 = vector.extract_strided_slice %50 {offsets = [0, 24], sizes = [8, 8], strides = [1, 1]} : vector<16x32xf32> to vector<8x8xf32>
    %112 = vector.extract_strided_slice %57 {offsets = [0, 24], sizes = [8, 8], strides = [1, 1]} : vector<16x32xf32> to vector<8x8xf32>
    %113 = vector.extract_strided_slice %64 {offsets = [0, 24], sizes = [8, 8], strides = [1, 1]} : vector<16x32xf32> to vector<8x8xf32>
    %cst_51 = arith.constant dense<0.000000e+00> : vector<8x8xf32>
    %114 = tpu.matmul %111, %112, %cst_51 {dimension_numbers = #tpu.dot_dimension_numbers<[1], [1], [0], [0], [0, 0, 1, 0], [], []>} : vector<8x8xf32>, vector<8x8xf32>, vector<8x8xf32> -> vector<8x8xf32>
    %cst_52 = arith.constant 0.353553385 : f32
    %115 = vector.broadcast %cst_52 : f32 to vector<8x8xf32>
    %116 = arith.mulf %114, %115 : vector<8x8xf32>
    %117 = vector.broadcast %65 : vector<1x8xf32> to vector<8x8xf32>
    %118 = arith.addf %116, %117 : vector<8x8xf32>
    %119 = math.exp %118 : vector<8x8xf32>
    %cst_53 = arith.constant dense<0.000000e+00> : vector<8xf32>
    %120 = vector.multi_reduction <add>, %119, %cst_53 [1] : vector<8x8xf32> to vector<8xf32>
    %121 = vector.shape_cast %120 : vector<8xf32> to vector<8x1xf32>
    %122 = tpu.reciprocal %121 {approx = true} : vector<8x1xf32> -> vector<8x1xf32>
    %123 = vector.broadcast %122 : vector<8x1xf32> to vector<8x8xf32>
    %124 = arith.mulf %119, %123 : vector<8x8xf32>
    %cst_54 = arith.constant dense<0.000000e+00> : vector<8x8xf32>
    %125 = tpu.matmul %124, %113, %cst_54 {dimension_numbers = #tpu.dot_dimension_numbers<[1], [0], [0], [1], [0, 0, 1, 1], [], []>} : vector<8x8xf32>, vector<8x8xf32>, vector<8x8xf32> -> vector<8x8xf32>
    %126 = tpu.concatenate %80, %95, %110, %125 in 1 : vector<8x8xf32>, vector<8x8xf32>, vector<8x8xf32>, vector<8x8xf32> -> vector<8x32xf32>
    %127 = vector.extract_strided_slice %43 {offsets = [1, 0], sizes = [1, 8], strides = [1, 1]} : vector<2x8xf32> to vector<1x8xf32>
    %128 = vector.extract_strided_slice %50 {offsets = [8, 0], sizes = [8, 8], strides = [1, 1]} : vector<16x32xf32> to vector<8x8xf32>
    %129 = vector.extract_strided_slice %57 {offsets = [8, 0], sizes = [8, 8], strides = [1, 1]} : vector<16x32xf32> to vector<8x8xf32>
    %130 = vector.extract_strided_slice %64 {offsets = [8, 0], sizes = [8, 8], strides = [1, 1]} : vector<16x32xf32> to vector<8x8xf32>
    %cst_55 = arith.constant dense<0.000000e+00> : vector<8x8xf32>
    %131 = tpu.matmul %128, %129, %cst_55 {dimension_numbers = #tpu.dot_dimension_numbers<[1], [1], [0], [0], [0, 0, 1, 0], [], []>} : vector<8x8xf32>, vector<8x8xf32>, vector<8x8xf32> -> vector<8x8xf32>
    %cst_56 = arith.constant 0.353553385 : f32
    %132 = vector.broadcast %cst_56 : f32 to vector<8x8xf32>
    %133 = arith.mulf %131, %132 : vector<8x8xf32>
    %134 = vector.broadcast %127 : vector<1x8xf32> to vector<8x8xf32>
    %135 = arith.addf %133, %134 : vector<8x8xf32>
    %136 = math.exp %135 : vector<8x8xf32>
    %cst_57 = arith.constant dense<0.000000e+00> : vector<8xf32>
    %137 = vector.multi_reduction <add>, %136, %cst_57 [1] : vector<8x8xf32> to vector<8xf32>
    %138 = vector.shape_cast %137 : vector<8xf32> to vector<8x1xf32>
    %139 = tpu.reciprocal %138 {approx = true} : vector<8x1xf32> -> vector<8x1xf32>
    %140 = vector.broadcast %139 : vector<8x1xf32> to vector<8x8xf32>
    %141 = arith.mulf %136, %140 : vector<8x8xf32>
    %cst_58 = arith.constant dense<0.000000e+00> : vector<8x8xf32>
    %142 = tpu.matmul %141, %130, %cst_58 {dimension_numbers = #tpu.dot_dimension_numbers<[1], [0], [0], [1], [0, 0, 1, 1], [], []>} : vector<8x8xf32>, vector<8x8xf32>, vector<8x8xf32> -> vector<8x8xf32>
    %143 = vector.extract_strided_slice %50 {offsets = [8, 8], sizes = [8, 8], strides = [1, 1]} : vector<16x32xf32> to vector<8x8xf32>
    %144 = vector.extract_strided_slice %57 {offsets = [8, 8], sizes = [8, 8], strides = [1, 1]} : vector<16x32xf32> to vector<8x8xf32>
    %145 = vector.extract_strided_slice %64 {offsets = [8, 8], sizes = [8, 8], strides = [1, 1]} : vector<16x32xf32> to vector<8x8xf32>
    %cst_59 = arith.constant dense<0.000000e+00> : vector<8x8xf32>
    %146 = tpu.matmul %143, %144, %cst_59 {dimension_numbers = #tpu.dot_dimension_numbers<[1], [1], [0], [0], [0, 0, 1, 0], [], []>} : vector<8x8xf32>, vector<8x8xf32>, vector<8x8xf32> -> vector<8x8xf32>
    %cst_60 = arith.constant 0.353553385 : f32
    %147 = vector.broadcast %cst_60 : f32 to vector<8x8xf32>
    %148 = arith.mulf %146, %147 : vector<8x8xf32>
    %149 = vector.broadcast %127 : vector<1x8xf32> to vector<8x8xf32>
    %150 = arith.addf %148, %149 : vector<8x8xf32>
    %151 = math.exp %150 : vector<8x8xf32>
    %cst_61 = arith.constant dense<0.000000e+00> : vector<8xf32>
    %152 = vector.multi_reduction <add>, %151, %cst_61 [1] : vector<8x8xf32> to vector<8xf32>
    %153 = vector.shape_cast %152 : vector<8xf32> to vector<8x1xf32>
    %154 = tpu.reciprocal %153 {approx = true} : vector<8x1xf32> -> vector<8x1xf32>
    %155 = vector.broadcast %154 : vector<8x1xf32> to vector<8x8xf32>
    %156 = arith.mulf %151, %155 : vector<8x8xf32>
    %cst_62 = arith.constant dense<0.000000e+00> : vector<8x8xf32>
    %157 = tpu.matmul %156, %145, %cst_62 {dimension_numbers = #tpu.dot_dimension_numbers<[1], [0], [0], [1], [0, 0, 1, 1], [], []>} : vector<8x8xf32>, vector<8x8xf32>, vector<8x8xf32> -> vector<8x8xf32>
    %158 = vector.extract_strided_slice %50 {offsets = [8, 16], sizes = [8, 8], strides = [1, 1]} : vector<16x32xf32> to vector<8x8xf32>
    %159 = vector.extract_strided_slice %57 {offsets = [8, 16], sizes = [8, 8], strides = [1, 1]} : vector<16x32xf32> to vector<8x8xf32>
    %160 = vector.extract_strided_slice %64 {offsets = [8, 16], sizes = [8, 8], strides = [1, 1]} : vector<16x32xf32> to vector<8x8xf32>
    %cst_63 = arith.constant dense<0.000000e+00> : vector<8x8xf32>
    %161 = tpu.matmul %158, %159, %cst_63 {dimension_numbers = #tpu.dot_dimension_numbers<[1], [1], [0], [0], [0, 0, 1, 0], [], []>} : vector<8x8xf32>, vector<8x8xf32>, vector<8x8xf32> -> vector<8x8xf32>
    %cst_64 = arith.constant 0.353553385 : f32
    %162 = vector.broadcast %cst_64 : f32 to vector<8x8xf32>
    %163 = arith.mulf %161, %162 : vector<8x8xf32>
    %164 = vector.broadcast %127 : vector<1x8xf32> to vector<8x8xf32>
    %165 = arith.addf %163, %164 : vector<8x8xf32>
    %166 = math.exp %165 : vector<8x8xf32>
    %cst_65 = arith.constant dense<0.000000e+00> : vector<8xf32>
    %167 = vector.multi_reduction <add>, %166, %cst_65 [1] : vector<8x8xf32> to vector<8xf32>
    %168 = vector.shape_cast %167 : vector<8xf32> to vector<8x1xf32>
    %169 = tpu.reciprocal %168 {approx = true} : vector<8x1xf32> -> vector<8x1xf32>
    %170 = vector.broadcast %169 : vector<8x1xf32> to vector<8x8xf32>
    %171 = arith.mulf %166, %170 : vector<8x8xf32>
    %cst_66 = arith.constant dense<0.000000e+00> : vector<8x8xf32>
    %172 = tpu.matmul %171, %160, %cst_66 {dimension_numbers = #tpu.dot_dimension_numbers<[1], [0], [0], [1], [0, 0, 1, 1], [], []>} : vector<8x8xf32>, vector<8x8xf32>, vector<8x8xf32> -> vector<8x8xf32>
    %173 = vector.extract_strided_slice %50 {offsets = [8, 24], sizes = [8, 8], strides = [1, 1]} : vector<16x32xf32> to vector<8x8xf32>
    %174 = vector.extract_strided_slice %57 {offsets = [8, 24], sizes = [8, 8], strides = [1, 1]} : vector<16x32xf32> to vector<8x8xf32>
    %175 = vector.extract_strided_slice %64 {offsets = [8, 24], sizes = [8, 8], strides = [1, 1]} : vector<16x32xf32> to vector<8x8xf32>
    %cst_67 = arith.constant dense<0.000000e+00> : vector<8x8xf32>
    %176 = tpu.matmul %173, %174, %cst_67 {dimension_numbers = #tpu.dot_dimension_numbers<[1], [1], [0], [0], [0, 0, 1, 0], [], []>} : vector<8x8xf32>, vector<8x8xf32>, vector<8x8xf32> -> vector<8x8xf32>
    %cst_68 = arith.constant 0.353553385 : f32
    %177 = vector.broadcast %cst_68 : f32 to vector<8x8xf32>
    %178 = arith.mulf %176, %177 : vector<8x8xf32>
    %179 = vector.broadcast %127 : vector<1x8xf32> to vector<8x8xf32>
    %180 = arith.addf %178, %179 : vector<8x8xf32>
    %181 = math.exp %180 : vector<8x8xf32>
    %cst_69 = arith.constant dense<0.000000e+00> : vector<8xf32>
    %182 = vector.multi_reduction <add>, %181, %cst_69 [1] : vector<8x8xf32> to vector<8xf32>
    %183 = vector.shape_cast %182 : vector<8xf32> to vector<8x1xf32>
    %184 = tpu.reciprocal %183 {approx = true} : vector<8x1xf32> -> vector<8x1xf32>
    %185 = vector.broadcast %184 : vector<8x1xf32> to vector<8x8xf32>
    %186 = arith.mulf %181, %185 : vector<8x8xf32>
    %cst_70 = arith.constant dense<0.000000e+00> : vector<8x8xf32>
    %187 = tpu.matmul %186, %175, %cst_70 {dimension_numbers = #tpu.dot_dimension_numbers<[1], [0], [0], [1], [0, 0, 1, 1], [], []>} : vector<8x8xf32>, vector<8x8xf32>, vector<8x8xf32> -> vector<8x8xf32>
    %188 = tpu.concatenate %142, %157, %172, %187 in 1 : vector<8x8xf32>, vector<8x8xf32>, vector<8x8xf32>, vector<8x8xf32> -> vector<8x32xf32>
    %189 = tpu.concatenate %126, %188 in 0 : vector<8x32xf32>, vector<8x32xf32> -> vector<16x32xf32>
    %c0_71 = arith.constant 0 : index
    %c0_72 = arith.constant 0 : index
    %c0_73 = arith.constant 0 : index
    %190 = vector.load %arg12[%c0_71, %c0_72, %c0_73] : memref<2x32x32xf32, #tpu.memory_space<vmem>>, vector<1x32x32xf32>
    %191 = vector.shape_cast %190 : vector<1x32x32xf32> to vector<32x32xf32>
    %cst_74 = arith.constant dense<0.000000e+00> : vector<16x32xf32>
    %192 = tpu.matmul %189, %191, %cst_74 {dimension_numbers = #tpu.dot_dimension_numbers<[1], [0], [0], [1], [0, 0, 1, 1], [], []>} : vector<16x32xf32>, vector<32x32xf32>, vector<16x32xf32> -> vector<16x32xf32>
    %c0_75 = arith.constant 0 : index
    %c0_76 = arith.constant 0 : index
    %c0_77 = arith.constant 0 : index
    %193 = vector.load %arg13[%c0_75, %c0_76, %c0_77] : memref<2x1x32xf32, #tpu.memory_space<vmem>>, vector<1x1x32xf32>
    %194 = vector.shape_cast %193 : vector<1x1x32xf32> to vector<1x32xf32>
    %195 = vector.broadcast %194 : vector<1x32xf32> to vector<16x32xf32>
    %196 = arith.addf %192, %195 : vector<16x32xf32>
    %197 = arith.addf %196, %37 : vector<16x32xf32>
    %c0_78 = arith.constant 0 : index
    %c0_79 = arith.constant 0 : index
    %c0_80 = arith.constant 0 : index
    %198 = vector.load %arg14[%c0_78, %c0_79, %c0_80] : memref<2x1x32xf32, #tpu.memory_space<vmem>>, vector<1x1x32xf32>
    %199 = vector.shape_cast %198 : vector<1x1x32xf32> to vector<1x32xf32>
    %c0_81 = arith.constant 0 : index
    %c0_82 = arith.constant 0 : index
    %c0_83 = arith.constant 0 : index
    %200 = vector.load %arg15[%c0_81, %c0_82, %c0_83] : memref<2x1x32xf32, #tpu.memory_space<vmem>>, vector<1x1x32xf32>
    %201 = vector.shape_cast %200 : vector<1x1x32xf32> to vector<1x32xf32>
    %cst_84 = arith.constant dense<0.000000e+00> : vector<16xf32>
    %202 = vector.multi_reduction <add>, %197, %cst_84 [1] : vector<16x32xf32> to vector<16xf32>
    %203 = vector.shape_cast %202 : vector<16xf32> to vector<16x1xf32>
    %cst_85 = arith.constant 3.200000e+01 : f32
    %204 = vector.broadcast %cst_85 : f32 to vector<16x1xf32>
    %205 = arith.divf %203, %204 : vector<16x1xf32>
    %206 = vector.broadcast %205 : vector<16x1xf32> to vector<16x32xf32>
    %207 = arith.subf %197, %206 : vector<16x32xf32>
    %208 = arith.mulf %207, %207 : vector<16x32xf32>
    %cst_86 = arith.constant dense<0.000000e+00> : vector<16xf32>
    %209 = vector.multi_reduction <add>, %208, %cst_86 [1] : vector<16x32xf32> to vector<16xf32>
    %210 = vector.shape_cast %209 : vector<16xf32> to vector<16x1xf32>
    %cst_87 = arith.constant 3.200000e+01 : f32
    %211 = vector.broadcast %cst_87 : f32 to vector<16x1xf32>
    %212 = arith.divf %210, %211 : vector<16x1xf32>
    %cst_88 = arith.constant 9.99999996E-13 : f32
    %213 = vector.broadcast %cst_88 : f32 to vector<16x1xf32>
    %214 = arith.addf %212, %213 : vector<16x1xf32>
    %215 = math.rsqrt %214 : vector<16x1xf32>
    %216 = vector.broadcast %215 : vector<16x1xf32> to vector<16x32xf32>
    %217 = arith.mulf %207, %216 : vector<16x32xf32>
    %218 = vector.broadcast %199 : vector<1x32xf32> to vector<16x32xf32>
    %219 = arith.mulf %217, %218 : vector<16x32xf32>
    %220 = vector.broadcast %201 : vector<1x32xf32> to vector<16x32xf32>
    %221 = arith.addf %219, %220 : vector<16x32xf32>
    %c0_89 = arith.constant 0 : index
    %c0_90 = arith.constant 0 : index
    %c0_91 = arith.constant 0 : index
    %222 = vector.load %arg16[%c0_89, %c0_90, %c0_91] : memref<2x32x64xf32, #tpu.memory_space<vmem>>, vector<1x32x64xf32>
    %223 = vector.shape_cast %222 : vector<1x32x64xf32> to vector<32x64xf32>
    %cst_92 = arith.constant dense<0.000000e+00> : vector<16x64xf32>
    %224 = tpu.matmul %221, %223, %cst_92 {dimension_numbers = #tpu.dot_dimension_numbers<[1], [0], [0], [1], [0, 0, 1, 1], [], []>} : vector<16x32xf32>, vector<32x64xf32>, vector<16x64xf32> -> vector<16x64xf32>
    %c0_93 = arith.constant 0 : index
    %c0_94 = arith.constant 0 : index
    %c0_95 = arith.constant 0 : index
    %225 = vector.load %arg17[%c0_93, %c0_94, %c0_95] : memref<2x1x64xf32, #tpu.memory_space<vmem>>, vector<1x1x64xf32>
    %226 = vector.shape_cast %225 : vector<1x1x64xf32> to vector<1x64xf32>
    %227 = vector.broadcast %226 : vector<1x64xf32> to vector<16x64xf32>
    %228 = arith.addf %224, %227 : vector<16x64xf32>
    %229 = arith.mulf %228, %228 : vector<16x64xf32>
    %230 = arith.mulf %229, %228 : vector<16x64xf32>
    %cst_96 = arith.constant 5.000000e-01 : f32
    %231 = vector.broadcast %cst_96 : f32 to vector<16x64xf32>
    %232 = arith.mulf %231, %228 : vector<16x64xf32>
    %cst_97 = arith.constant 4.471500e-02 : f32
    %233 = vector.broadcast %cst_97 : f32 to vector<16x64xf32>
    %234 = arith.mulf %233, %230 : vector<16x64xf32>
    %235 = arith.addf %228, %234 : vector<16x64xf32>
    %cst_98 = arith.constant 0.797884583 : f32
    %236 = vector.broadcast %cst_98 : f32 to vector<16x64xf32>
    %237 = arith.mulf %236, %235 : vector<16x64xf32>
    %238 = math.tanh %237 : vector<16x64xf32>
    %cst_99 = arith.constant 1.000000e+00 : f32
    %239 = vector.broadcast %cst_99 : f32 to vector<16x64xf32>
    %240 = arith.addf %239, %238 : vector<16x64xf32>
    %241 = arith.mulf %232, %240 : vector<16x64xf32>
    %c0_100 = arith.constant 0 : index
    %c0_101 = arith.constant 0 : index
    %c0_102 = arith.constant 0 : index
    %242 = vector.load %arg18[%c0_100, %c0_101, %c0_102] : memref<2x64x32xf32, #tpu.memory_space<vmem>>, vector<1x64x32xf32>
    %243 = vector.shape_cast %242 : vector<1x64x32xf32> to vector<64x32xf32>
    %cst_103 = arith.constant dense<0.000000e+00> : vector<16x32xf32>
    %244 = tpu.matmul %241, %243, %cst_103 {dimension_numbers = #tpu.dot_dimension_numbers<[1], [0], [0], [1], [0, 0, 1, 1], [], []>} : vector<16x64xf32>, vector<64x32xf32>, vector<16x32xf32> -> vector<16x32xf32>
    %c0_104 = arith.constant 0 : index
    %c0_105 = arith.constant 0 : index
    %c0_106 = arith.constant 0 : index
    %245 = vector.load %arg19[%c0_104, %c0_105, %c0_106] : memref<2x1x32xf32, #tpu.memory_space<vmem>>, vector<1x1x32xf32>
    %246 = vector.shape_cast %245 : vector<1x1x32xf32> to vector<1x32xf32>
    %247 = vector.broadcast %246 : vector<1x32xf32> to vector<16x32xf32>
    %248 = arith.addf %244, %247 : vector<16x32xf32>
    %249 = arith.addf %248, %221 : vector<16x32xf32>
    %c0_107 = arith.constant 0 : index
    %c0_108 = arith.constant 0 : index
    %c0_109 = arith.constant 0 : index
    %250 = vector.load %arg20[%c0_107, %c0_108, %c0_109] : memref<2x1x32xf32, #tpu.memory_space<vmem>>, vector<1x1x32xf32>
    %251 = vector.shape_cast %250 : vector<1x1x32xf32> to vector<1x32xf32>
    %c0_110 = arith.constant 0 : index
    %c0_111 = arith.constant 0 : index
    %c0_112 = arith.constant 0 : index
    %252 = vector.load %arg21[%c0_110, %c0_111, %c0_112] : memref<2x1x32xf32, #tpu.memory_space<vmem>>, vector<1x1x32xf32>
    %253 = vector.shape_cast %252 : vector<1x1x32xf32> to vector<1x32xf32>
    %cst_113 = arith.constant dense<0.000000e+00> : vector<16xf32>
    %254 = vector.multi_reduction <add>, %249, %cst_113 [1] : vector<16x32xf32> to vector<16xf32>
    %255 = vector.shape_cast %254 : vector<16xf32> to vector<16x1xf32>
    %cst_114 = arith.constant 3.200000e+01 : f32
    %256 = vector.broadcast %cst_114 : f32 to vector<16x1xf32>
    %257 = arith.divf %255, %256 : vector<16x1xf32>
    %258 = vector.broadcast %257 : vector<16x1xf32> to vector<16x32xf32>
    %259 = arith.subf %249, %258 : vector<16x32xf32>
    %260 = arith.mulf %259, %259 : vector<16x32xf32>
    %cst_115 = arith.constant dense<0.000000e+00> : vector<16xf32>
    %261 = vector.multi_reduction <add>, %260, %cst_115 [1] : vector<16x32xf32> to vector<16xf32>
    %262 = vector.shape_cast %261 : vector<16xf32> to vector<16x1xf32>
    %cst_116 = arith.constant 3.200000e+01 : f32
    %263 = vector.broadcast %cst_116 : f32 to vector<16x1xf32>
    %264 = arith.divf %262, %263 : vector<16x1xf32>
    %cst_117 = arith.constant 9.99999996E-13 : f32
    %265 = vector.broadcast %cst_117 : f32 to vector<16x1xf32>
    %266 = arith.addf %264, %265 : vector<16x1xf32>
    %267 = math.rsqrt %266 : vector<16x1xf32>
    %268 = vector.broadcast %267 : vector<16x1xf32> to vector<16x32xf32>
    %269 = arith.mulf %259, %268 : vector<16x32xf32>
    %270 = vector.broadcast %251 : vector<1x32xf32> to vector<16x32xf32>
    %271 = arith.mulf %269, %270 : vector<16x32xf32>
    %272 = vector.broadcast %253 : vector<1x32xf32> to vector<16x32xf32>
    %273 = arith.addf %271, %272 : vector<16x32xf32>
    %c1 = arith.constant 1 : index
    %c0_118 = arith.constant 0 : index
    %c0_119 = arith.constant 0 : index
    %274 = vector.load %arg6[%c1, %c0_118, %c0_119] : memref<2x32x32xf32, #tpu.memory_space<vmem>>, vector<1x32x32xf32>
    %275 = vector.shape_cast %274 : vector<1x32x32xf32> to vector<32x32xf32>
    %cst_120 = arith.constant dense<0.000000e+00> : vector<16x32xf32>
    %276 = tpu.matmul %273, %275, %cst_120 {dimension_numbers = #tpu.dot_dimension_numbers<[1], [0], [0], [1], [0, 0, 1, 1], [], []>} : vector<16x32xf32>, vector<32x32xf32>, vector<16x32xf32> -> vector<16x32xf32>
    %c1_121 = arith.constant 1 : index
    %c0_122 = arith.constant 0 : index
    %c0_123 = arith.constant 0 : index
    %277 = vector.load %arg9[%c1_121, %c0_122, %c0_123] : memref<2x1x32xf32, #tpu.memory_space<vmem>>, vector<1x1x32xf32>
    %278 = vector.shape_cast %277 : vector<1x1x32xf32> to vector<1x32xf32>
    %279 = vector.broadcast %278 : vector<1x32xf32> to vector<16x32xf32>
    %280 = arith.addf %276, %279 : vector<16x32xf32>
    %c1_124 = arith.constant 1 : index
    %c0_125 = arith.constant 0 : index
    %c0_126 = arith.constant 0 : index
    %281 = vector.load %arg7[%c1_124, %c0_125, %c0_126] : memref<2x32x32xf32, #tpu.memory_space<vmem>>, vector<1x32x32xf32>
    %282 = vector.shape_cast %281 : vector<1x32x32xf32> to vector<32x32xf32>
    %cst_127 = arith.constant dense<0.000000e+00> : vector<16x32xf32>
    %283 = tpu.matmul %273, %282, %cst_127 {dimension_numbers = #tpu.dot_dimension_numbers<[1], [0], [0], [1], [0, 0, 1, 1], [], []>} : vector<16x32xf32>, vector<32x32xf32>, vector<16x32xf32> -> vector<16x32xf32>
    %c1_128 = arith.constant 1 : index
    %c0_129 = arith.constant 0 : index
    %c0_130 = arith.constant 0 : index
    %284 = vector.load %arg10[%c1_128, %c0_129, %c0_130] : memref<2x1x32xf32, #tpu.memory_space<vmem>>, vector<1x1x32xf32>
    %285 = vector.shape_cast %284 : vector<1x1x32xf32> to vector<1x32xf32>
    %286 = vector.broadcast %285 : vector<1x32xf32> to vector<16x32xf32>
    %287 = arith.addf %283, %286 : vector<16x32xf32>
    %c1_131 = arith.constant 1 : index
    %c0_132 = arith.constant 0 : index
    %c0_133 = arith.constant 0 : index
    %288 = vector.load %arg8[%c1_131, %c0_132, %c0_133] : memref<2x32x32xf32, #tpu.memory_space<vmem>>, vector<1x32x32xf32>
    %289 = vector.shape_cast %288 : vector<1x32x32xf32> to vector<32x32xf32>
    %cst_134 = arith.constant dense<0.000000e+00> : vector<16x32xf32>
    %290 = tpu.matmul %273, %289, %cst_134 {dimension_numbers = #tpu.dot_dimension_numbers<[1], [0], [0], [1], [0, 0, 1, 1], [], []>} : vector<16x32xf32>, vector<32x32xf32>, vector<16x32xf32> -> vector<16x32xf32>
    %c1_135 = arith.constant 1 : index
    %c0_136 = arith.constant 0 : index
    %c0_137 = arith.constant 0 : index
    %291 = vector.load %arg11[%c1_135, %c0_136, %c0_137] : memref<2x1x32xf32, #tpu.memory_space<vmem>>, vector<1x1x32xf32>
    %292 = vector.shape_cast %291 : vector<1x1x32xf32> to vector<1x32xf32>
    %293 = vector.broadcast %292 : vector<1x32xf32> to vector<16x32xf32>
    %294 = arith.addf %290, %293 : vector<16x32xf32>
    %295 = vector.extract_strided_slice %43 {offsets = [0, 0], sizes = [1, 8], strides = [1, 1]} : vector<2x8xf32> to vector<1x8xf32>
    %296 = vector.extract_strided_slice %280 {offsets = [0, 0], sizes = [8, 8], strides = [1, 1]} : vector<16x32xf32> to vector<8x8xf32>
    %297 = vector.extract_strided_slice %287 {offsets = [0, 0], sizes = [8, 8], strides = [1, 1]} : vector<16x32xf32> to vector<8x8xf32>
    %298 = vector.extract_strided_slice %294 {offsets = [0, 0], sizes = [8, 8], strides = [1, 1]} : vector<16x32xf32> to vector<8x8xf32>
    %cst_138 = arith.constant dense<0.000000e+00> : vector<8x8xf32>
    %299 = tpu.matmul %296, %297, %cst_138 {dimension_numbers = #tpu.dot_dimension_numbers<[1], [1], [0], [0], [0, 0, 1, 0], [], []>} : vector<8x8xf32>, vector<8x8xf32>, vector<8x8xf32> -> vector<8x8xf32>
    %cst_139 = arith.constant 0.353553385 : f32
    %300 = vector.broadcast %cst_139 : f32 to vector<8x8xf32>
    %301 = arith.mulf %299, %300 : vector<8x8xf32>
    %302 = vector.broadcast %295 : vector<1x8xf32> to vector<8x8xf32>
    %303 = arith.addf %301, %302 : vector<8x8xf32>
    %304 = math.exp %303 : vector<8x8xf32>
    %cst_140 = arith.constant dense<0.000000e+00> : vector<8xf32>
    %305 = vector.multi_reduction <add>, %304, %cst_140 [1] : vector<8x8xf32> to vector<8xf32>
    %306 = vector.shape_cast %305 : vector<8xf32> to vector<8x1xf32>
    %307 = tpu.reciprocal %306 {approx = true} : vector<8x1xf32> -> vector<8x1xf32>
    %308 = vector.broadcast %307 : vector<8x1xf32> to vector<8x8xf32>
    %309 = arith.mulf %304, %308 : vector<8x8xf32>
    %cst_141 = arith.constant dense<0.000000e+00> : vector<8x8xf32>
    %310 = tpu.matmul %309, %298, %cst_141 {dimension_numbers = #tpu.dot_dimension_numbers<[1], [0], [0], [1], [0, 0, 1, 1], [], []>} : vector<8x8xf32>, vector<8x8xf32>, vector<8x8xf32> -> vector<8x8xf32>
    %311 = vector.extract_strided_slice %280 {offsets = [0, 8], sizes = [8, 8], strides = [1, 1]} : vector<16x32xf32> to vector<8x8xf32>
    %312 = vector.extract_strided_slice %287 {offsets = [0, 8], sizes = [8, 8], strides = [1, 1]} : vector<16x32xf32> to vector<8x8xf32>
    %313 = vector.extract_strided_slice %294 {offsets = [0, 8], sizes = [8, 8], strides = [1, 1]} : vector<16x32xf32> to vector<8x8xf32>
    %cst_142 = arith.constant dense<0.000000e+00> : vector<8x8xf32>
    %314 = tpu.matmul %311, %312, %cst_142 {dimension_numbers = #tpu.dot_dimension_numbers<[1], [1], [0], [0], [0, 0, 1, 0], [], []>} : vector<8x8xf32>, vector<8x8xf32>, vector<8x8xf32> -> vector<8x8xf32>
    %cst_143 = arith.constant 0.353553385 : f32
    %315 = vector.broadcast %cst_143 : f32 to vector<8x8xf32>
    %316 = arith.mulf %314, %315 : vector<8x8xf32>
    %317 = vector.broadcast %295 : vector<1x8xf32> to vector<8x8xf32>
    %318 = arith.addf %316, %317 : vector<8x8xf32>
    %319 = math.exp %318 : vector<8x8xf32>
    %cst_144 = arith.constant dense<0.000000e+00> : vector<8xf32>
    %320 = vector.multi_reduction <add>, %319, %cst_144 [1] : vector<8x8xf32> to vector<8xf32>
    %321 = vector.shape_cast %320 : vector<8xf32> to vector<8x1xf32>
    %322 = tpu.reciprocal %321 {approx = true} : vector<8x1xf32> -> vector<8x1xf32>
    %323 = vector.broadcast %322 : vector<8x1xf32> to vector<8x8xf32>
    %324 = arith.mulf %319, %323 : vector<8x8xf32>
    %cst_145 = arith.constant dense<0.000000e+00> : vector<8x8xf32>
    %325 = tpu.matmul %324, %313, %cst_145 {dimension_numbers = #tpu.dot_dimension_numbers<[1], [0], [0], [1], [0, 0, 1, 1], [], []>} : vector<8x8xf32>, vector<8x8xf32>, vector<8x8xf32> -> vector<8x8xf32>
    %326 = vector.extract_strided_slice %280 {offsets = [0, 16], sizes = [8, 8], strides = [1, 1]} : vector<16x32xf32> to vector<8x8xf32>
    %327 = vector.extract_strided_slice %287 {offsets = [0, 16], sizes = [8, 8], strides = [1, 1]} : vector<16x32xf32> to vector<8x8xf32>
    %328 = vector.extract_strided_slice %294 {offsets = [0, 16], sizes = [8, 8], strides = [1, 1]} : vector<16x32xf32> to vector<8x8xf32>
    %cst_146 = arith.constant dense<0.000000e+00> : vector<8x8xf32>
    %329 = tpu.matmul %326, %327, %cst_146 {dimension_numbers = #tpu.dot_dimension_numbers<[1], [1], [0], [0], [0, 0, 1, 0], [], []>} : vector<8x8xf32>, vector<8x8xf32>, vector<8x8xf32> -> vector<8x8xf32>
    %cst_147 = arith.constant 0.353553385 : f32
    %330 = vector.broadcast %cst_147 : f32 to vector<8x8xf32>
    %331 = arith.mulf %329, %330 : vector<8x8xf32>
    %332 = vector.broadcast %295 : vector<1x8xf32> to vector<8x8xf32>
    %333 = arith.addf %331, %332 : vector<8x8xf32>
    %334 = math.exp %333 : vector<8x8xf32>
    %cst_148 = arith.constant dense<0.000000e+00> : vector<8xf32>
    %335 = vector.multi_reduction <add>, %334, %cst_148 [1] : vector<8x8xf32> to vector<8xf32>
    %336 = vector.shape_cast %335 : vector<8xf32> to vector<8x1xf32>
    %337 = tpu.reciprocal %336 {approx = true} : vector<8x1xf32> -> vector<8x1xf32>
    %338 = vector.broadcast %337 : vector<8x1xf32> to vector<8x8xf32>
    %339 = arith.mulf %334, %338 : vector<8x8xf32>
    %cst_149 = arith.constant dense<0.000000e+00> : vector<8x8xf32>
    %340 = tpu.matmul %339, %328, %cst_149 {dimension_numbers = #tpu.dot_dimension_numbers<[1], [0], [0], [1], [0, 0, 1, 1], [], []>} : vector<8x8xf32>, vector<8x8xf32>, vector<8x8xf32> -> vector<8x8xf32>
    %341 = vector.extract_strided_slice %280 {offsets = [0, 24], sizes = [8, 8], strides = [1, 1]} : vector<16x32xf32> to vector<8x8xf32>
    %342 = vector.extract_strided_slice %287 {offsets = [0, 24], sizes = [8, 8], strides = [1, 1]} : vector<16x32xf32> to vector<8x8xf32>
    %343 = vector.extract_strided_slice %294 {offsets = [0, 24], sizes = [8, 8], strides = [1, 1]} : vector<16x32xf32> to vector<8x8xf32>
    %cst_150 = arith.constant dense<0.000000e+00> : vector<8x8xf32>
    %344 = tpu.matmul %341, %342, %cst_150 {dimension_numbers = #tpu.dot_dimension_numbers<[1], [1], [0], [0], [0, 0, 1, 0], [], []>} : vector<8x8xf32>, vector<8x8xf32>, vector<8x8xf32> -> vector<8x8xf32>
    %cst_151 = arith.constant 0.353553385 : f32
    %345 = vector.broadcast %cst_151 : f32 to vector<8x8xf32>
    %346 = arith.mulf %344, %345 : vector<8x8xf32>
    %347 = vector.broadcast %295 : vector<1x8xf32> to vector<8x8xf32>
    %348 = arith.addf %346, %347 : vector<8x8xf32>
    %349 = math.exp %348 : vector<8x8xf32>
    %cst_152 = arith.constant dense<0.000000e+00> : vector<8xf32>
    %350 = vector.multi_reduction <add>, %349, %cst_152 [1] : vector<8x8xf32> to vector<8xf32>
    %351 = vector.shape_cast %350 : vector<8xf32> to vector<8x1xf32>
    %352 = tpu.reciprocal %351 {approx = true} : vector<8x1xf32> -> vector<8x1xf32>
    %353 = vector.broadcast %352 : vector<8x1xf32> to vector<8x8xf32>
    %354 = arith.mulf %349, %353 : vector<8x8xf32>
    %cst_153 = arith.constant dense<0.000000e+00> : vector<8x8xf32>
    %355 = tpu.matmul %354, %343, %cst_153 {dimension_numbers = #tpu.dot_dimension_numbers<[1], [0], [0], [1], [0, 0, 1, 1], [], []>} : vector<8x8xf32>, vector<8x8xf32>, vector<8x8xf32> -> vector<8x8xf32>
    %356 = tpu.concatenate %310, %325, %340, %355 in 1 : vector<8x8xf32>, vector<8x8xf32>, vector<8x8xf32>, vector<8x8xf32> -> vector<8x32xf32>
    %357 = vector.extract_strided_slice %43 {offsets = [1, 0], sizes = [1, 8], strides = [1, 1]} : vector<2x8xf32> to vector<1x8xf32>
    %358 = vector.extract_strided_slice %280 {offsets = [8, 0], sizes = [8, 8], strides = [1, 1]} : vector<16x32xf32> to vector<8x8xf32>
    %359 = vector.extract_strided_slice %287 {offsets = [8, 0], sizes = [8, 8], strides = [1, 1]} : vector<16x32xf32> to vector<8x8xf32>
    %360 = vector.extract_strided_slice %294 {offsets = [8, 0], sizes = [8, 8], strides = [1, 1]} : vector<16x32xf32> to vector<8x8xf32>
    %cst_154 = arith.constant dense<0.000000e+00> : vector<8x8xf32>
    %361 = tpu.matmul %358, %359, %cst_154 {dimension_numbers = #tpu.dot_dimension_numbers<[1], [1], [0], [0], [0, 0, 1, 0], [], []>} : vector<8x8xf32>, vector<8x8xf32>, vector<8x8xf32> -> vector<8x8xf32>
    %cst_155 = arith.constant 0.353553385 : f32
    %362 = vector.broadcast %cst_155 : f32 to vector<8x8xf32>
    %363 = arith.mulf %361, %362 : vector<8x8xf32>
    %364 = vector.broadcast %357 : vector<1x8xf32> to vector<8x8xf32>
    %365 = arith.addf %363, %364 : vector<8x8xf32>
    %366 = math.exp %365 : vector<8x8xf32>
    %cst_156 = arith.constant dense<0.000000e+00> : vector<8xf32>
    %367 = vector.multi_reduction <add>, %366, %cst_156 [1] : vector<8x8xf32> to vector<8xf32>
    %368 = vector.shape_cast %367 : vector<8xf32> to vector<8x1xf32>
    %369 = tpu.reciprocal %368 {approx = true} : vector<8x1xf32> -> vector<8x1xf32>
    %370 = vector.broadcast %369 : vector<8x1xf32> to vector<8x8xf32>
    %371 = arith.mulf %366, %370 : vector<8x8xf32>
    %cst_157 = arith.constant dense<0.000000e+00> : vector<8x8xf32>
    %372 = tpu.matmul %371, %360, %cst_157 {dimension_numbers = #tpu.dot_dimension_numbers<[1], [0], [0], [1], [0, 0, 1, 1], [], []>} : vector<8x8xf32>, vector<8x8xf32>, vector<8x8xf32> -> vector<8x8xf32>
    %373 = vector.extract_strided_slice %280 {offsets = [8, 8], sizes = [8, 8], strides = [1, 1]} : vector<16x32xf32> to vector<8x8xf32>
    %374 = vector.extract_strided_slice %287 {offsets = [8, 8], sizes = [8, 8], strides = [1, 1]} : vector<16x32xf32> to vector<8x8xf32>
    %375 = vector.extract_strided_slice %294 {offsets = [8, 8], sizes = [8, 8], strides = [1, 1]} : vector<16x32xf32> to vector<8x8xf32>
    %cst_158 = arith.constant dense<0.000000e+00> : vector<8x8xf32>
    %376 = tpu.matmul %373, %374, %cst_158 {dimension_numbers = #tpu.dot_dimension_numbers<[1], [1], [0], [0], [0, 0, 1, 0], [], []>} : vector<8x8xf32>, vector<8x8xf32>, vector<8x8xf32> -> vector<8x8xf32>
    %cst_159 = arith.constant 0.353553385 : f32
    %377 = vector.broadcast %cst_159 : f32 to vector<8x8xf32>
    %378 = arith.mulf %376, %377 : vector<8x8xf32>
    %379 = vector.broadcast %357 : vector<1x8xf32> to vector<8x8xf32>
    %380 = arith.addf %378, %379 : vector<8x8xf32>
    %381 = math.exp %380 : vector<8x8xf32>
    %cst_160 = arith.constant dense<0.000000e+00> : vector<8xf32>
    %382 = vector.multi_reduction <add>, %381, %cst_160 [1] : vector<8x8xf32> to vector<8xf32>
    %383 = vector.shape_cast %382 : vector<8xf32> to vector<8x1xf32>
    %384 = tpu.reciprocal %383 {approx = true} : vector<8x1xf32> -> vector<8x1xf32>
    %385 = vector.broadcast %384 : vector<8x1xf32> to vector<8x8xf32>
    %386 = arith.mulf %381, %385 : vector<8x8xf32>
    %cst_161 = arith.constant dense<0.000000e+00> : vector<8x8xf32>
    %387 = tpu.matmul %386, %375, %cst_161 {dimension_numbers = #tpu.dot_dimension_numbers<[1], [0], [0], [1], [0, 0, 1, 1], [], []>} : vector<8x8xf32>, vector<8x8xf32>, vector<8x8xf32> -> vector<8x8xf32>
    %388 = vector.extract_strided_slice %280 {offsets = [8, 16], sizes = [8, 8], strides = [1, 1]} : vector<16x32xf32> to vector<8x8xf32>
    %389 = vector.extract_strided_slice %287 {offsets = [8, 16], sizes = [8, 8], strides = [1, 1]} : vector<16x32xf32> to vector<8x8xf32>
    %390 = vector.extract_strided_slice %294 {offsets = [8, 16], sizes = [8, 8], strides = [1, 1]} : vector<16x32xf32> to vector<8x8xf32>
    %cst_162 = arith.constant dense<0.000000e+00> : vector<8x8xf32>
    %391 = tpu.matmul %388, %389, %cst_162 {dimension_numbers = #tpu.dot_dimension_numbers<[1], [1], [0], [0], [0, 0, 1, 0], [], []>} : vector<8x8xf32>, vector<8x8xf32>, vector<8x8xf32> -> vector<8x8xf32>
    %cst_163 = arith.constant 0.353553385 : f32
    %392 = vector.broadcast %cst_163 : f32 to vector<8x8xf32>
    %393 = arith.mulf %391, %392 : vector<8x8xf32>
    %394 = vector.broadcast %357 : vector<1x8xf32> to vector<8x8xf32>
    %395 = arith.addf %393, %394 : vector<8x8xf32>
    %396 = math.exp %395 : vector<8x8xf32>
    %cst_164 = arith.constant dense<0.000000e+00> : vector<8xf32>
    %397 = vector.multi_reduction <add>, %396, %cst_164 [1] : vector<8x8xf32> to vector<8xf32>
    %398 = vector.shape_cast %397 : vector<8xf32> to vector<8x1xf32>
    %399 = tpu.reciprocal %398 {approx = true} : vector<8x1xf32> -> vector<8x1xf32>
    %400 = vector.broadcast %399 : vector<8x1xf32> to vector<8x8xf32>
    %401 = arith.mulf %396, %400 : vector<8x8xf32>
    %cst_165 = arith.constant dense<0.000000e+00> : vector<8x8xf32>
    %402 = tpu.matmul %401, %390, %cst_165 {dimension_numbers = #tpu.dot_dimension_numbers<[1], [0], [0], [1], [0, 0, 1, 1], [], []>} : vector<8x8xf32>, vector<8x8xf32>, vector<8x8xf32> -> vector<8x8xf32>
    %403 = vector.extract_strided_slice %280 {offsets = [8, 24], sizes = [8, 8], strides = [1, 1]} : vector<16x32xf32> to vector<8x8xf32>
    %404 = vector.extract_strided_slice %287 {offsets = [8, 24], sizes = [8, 8], strides = [1, 1]} : vector<16x32xf32> to vector<8x8xf32>
    %405 = vector.extract_strided_slice %294 {offsets = [8, 24], sizes = [8, 8], strides = [1, 1]} : vector<16x32xf32> to vector<8x8xf32>
    %cst_166 = arith.constant dense<0.000000e+00> : vector<8x8xf32>
    %406 = tpu.matmul %403, %404, %cst_166 {dimension_numbers = #tpu.dot_dimension_numbers<[1], [1], [0], [0], [0, 0, 1, 0], [], []>} : vector<8x8xf32>, vector<8x8xf32>, vector<8x8xf32> -> vector<8x8xf32>
    %cst_167 = arith.constant 0.353553385 : f32
    %407 = vector.broadcast %cst_167 : f32 to vector<8x8xf32>
    %408 = arith.mulf %406, %407 : vector<8x8xf32>
    %409 = vector.broadcast %357 : vector<1x8xf32> to vector<8x8xf32>
    %410 = arith.addf %408, %409 : vector<8x8xf32>
    %411 = math.exp %410 : vector<8x8xf32>
    %cst_168 = arith.constant dense<0.000000e+00> : vector<8xf32>
    %412 = vector.multi_reduction <add>, %411, %cst_168 [1] : vector<8x8xf32> to vector<8xf32>
    %413 = vector.shape_cast %412 : vector<8xf32> to vector<8x1xf32>
    %414 = tpu.reciprocal %413 {approx = true} : vector<8x1xf32> -> vector<8x1xf32>
    %415 = vector.broadcast %414 : vector<8x1xf32> to vector<8x8xf32>
    %416 = arith.mulf %411, %415 : vector<8x8xf32>
    %cst_169 = arith.constant dense<0.000000e+00> : vector<8x8xf32>
    %417 = tpu.matmul %416, %405, %cst_169 {dimension_numbers = #tpu.dot_dimension_numbers<[1], [0], [0], [1], [0, 0, 1, 1], [], []>} : vector<8x8xf32>, vector<8x8xf32>, vector<8x8xf32> -> vector<8x8xf32>
    %418 = tpu.concatenate %372, %387, %402, %417 in 1 : vector<8x8xf32>, vector<8x8xf32>, vector<8x8xf32>, vector<8x8xf32> -> vector<8x32xf32>
    %419 = tpu.concatenate %356, %418 in 0 : vector<8x32xf32>, vector<8x32xf32> -> vector<16x32xf32>
    %c1_170 = arith.constant 1 : index
    %c0_171 = arith.constant 0 : index
    %c0_172 = arith.constant 0 : index
    %420 = vector.load %arg12[%c1_170, %c0_171, %c0_172] : memref<2x32x32xf32, #tpu.memory_space<vmem>>, vector<1x32x32xf32>
    %421 = vector.shape_cast %420 : vector<1x32x32xf32> to vector<32x32xf32>
    %cst_173 = arith.constant dense<0.000000e+00> : vector<16x32xf32>
    %422 = tpu.matmul %419, %421, %cst_173 {dimension_numbers = #tpu.dot_dimension_numbers<[1], [0], [0], [1], [0, 0, 1, 1], [], []>} : vector<16x32xf32>, vector<32x32xf32>, vector<16x32xf32> -> vector<16x32xf32>
    %c1_174 = arith.constant 1 : index
    %c0_175 = arith.constant 0 : index
    %c0_176 = arith.constant 0 : index
    %423 = vector.load %arg13[%c1_174, %c0_175, %c0_176] : memref<2x1x32xf32, #tpu.memory_space<vmem>>, vector<1x1x32xf32>
    %424 = vector.shape_cast %423 : vector<1x1x32xf32> to vector<1x32xf32>
    %425 = vector.broadcast %424 : vector<1x32xf32> to vector<16x32xf32>
    %426 = arith.addf %422, %425 : vector<16x32xf32>
    %427 = arith.addf %426, %273 : vector<16x32xf32>
    %c1_177 = arith.constant 1 : index
    %c0_178 = arith.constant 0 : index
    %c0_179 = arith.constant 0 : index
    %428 = vector.load %arg14[%c1_177, %c0_178, %c0_179] : memref<2x1x32xf32, #tpu.memory_space<vmem>>, vector<1x1x32xf32>
    %429 = vector.shape_cast %428 : vector<1x1x32xf32> to vector<1x32xf32>
    %c1_180 = arith.constant 1 : index
    %c0_181 = arith.constant 0 : index
    %c0_182 = arith.constant 0 : index
    %430 = vector.load %arg15[%c1_180, %c0_181, %c0_182] : memref<2x1x32xf32, #tpu.memory_space<vmem>>, vector<1x1x32xf32>
    %431 = vector.shape_cast %430 : vector<1x1x32xf32> to vector<1x32xf32>
    %cst_183 = arith.constant dense<0.000000e+00> : vector<16xf32>
    %432 = vector.multi_reduction <add>, %427, %cst_183 [1] : vector<16x32xf32> to vector<16xf32>
    %433 = vector.shape_cast %432 : vector<16xf32> to vector<16x1xf32>
    %cst_184 = arith.constant 3.200000e+01 : f32
    %434 = vector.broadcast %cst_184 : f32 to vector<16x1xf32>
    %435 = arith.divf %433, %434 : vector<16x1xf32>
    %436 = vector.broadcast %435 : vector<16x1xf32> to vector<16x32xf32>
    %437 = arith.subf %427, %436 : vector<16x32xf32>
    %438 = arith.mulf %437, %437 : vector<16x32xf32>
    %cst_185 = arith.constant dense<0.000000e+00> : vector<16xf32>
    %439 = vector.multi_reduction <add>, %438, %cst_185 [1] : vector<16x32xf32> to vector<16xf32>
    %440 = vector.shape_cast %439 : vector<16xf32> to vector<16x1xf32>
    %cst_186 = arith.constant 3.200000e+01 : f32
    %441 = vector.broadcast %cst_186 : f32 to vector<16x1xf32>
    %442 = arith.divf %440, %441 : vector<16x1xf32>
    %cst_187 = arith.constant 9.99999996E-13 : f32
    %443 = vector.broadcast %cst_187 : f32 to vector<16x1xf32>
    %444 = arith.addf %442, %443 : vector<16x1xf32>
    %445 = math.rsqrt %444 : vector<16x1xf32>
    %446 = vector.broadcast %445 : vector<16x1xf32> to vector<16x32xf32>
    %447 = arith.mulf %437, %446 : vector<16x32xf32>
    %448 = vector.broadcast %429 : vector<1x32xf32> to vector<16x32xf32>
    %449 = arith.mulf %447, %448 : vector<16x32xf32>
    %450 = vector.broadcast %431 : vector<1x32xf32> to vector<16x32xf32>
    %451 = arith.addf %449, %450 : vector<16x32xf32>
    %c1_188 = arith.constant 1 : index
    %c0_189 = arith.constant 0 : index
    %c0_190 = arith.constant 0 : index
    %452 = vector.load %arg16[%c1_188, %c0_189, %c0_190] : memref<2x32x64xf32, #tpu.memory_space<vmem>>, vector<1x32x64xf32>
    %453 = vector.shape_cast %452 : vector<1x32x64xf32> to vector<32x64xf32>
    %cst_191 = arith.constant dense<0.000000e+00> : vector<16x64xf32>
    %454 = tpu.matmul %451, %453, %cst_191 {dimension_numbers = #tpu.dot_dimension_numbers<[1], [0], [0], [1], [0, 0, 1, 1], [], []>} : vector<16x32xf32>, vector<32x64xf32>, vector<16x64xf32> -> vector<16x64xf32>
    %c1_192 = arith.constant 1 : index
    %c0_193 = arith.constant 0 : index
    %c0_194 = arith.constant 0 : index
    %455 = vector.load %arg17[%c1_192, %c0_193, %c0_194] : memref<2x1x64xf32, #tpu.memory_space<vmem>>, vector<1x1x64xf32>
    %456 = vector.shape_cast %455 : vector<1x1x64xf32> to vector<1x64xf32>
    %457 = vector.broadcast %456 : vector<1x64xf32> to vector<16x64xf32>
    %458 = arith.addf %454, %457 : vector<16x64xf32>
    %459 = arith.mulf %458, %458 : vector<16x64xf32>
    %460 = arith.mulf %459, %458 : vector<16x64xf32>
    %cst_195 = arith.constant 5.000000e-01 : f32
    %461 = vector.broadcast %cst_195 : f32 to vector<16x64xf32>
    %462 = arith.mulf %461, %458 : vector<16x64xf32>
    %cst_196 = arith.constant 4.471500e-02 : f32
    %463 = vector.broadcast %cst_196 : f32 to vector<16x64xf32>
    %464 = arith.mulf %463, %460 : vector<16x64xf32>
    %465 = arith.addf %458, %464 : vector<16x64xf32>
    %cst_197 = arith.constant 0.797884583 : f32
    %466 = vector.broadcast %cst_197 : f32 to vector<16x64xf32>
    %467 = arith.mulf %466, %465 : vector<16x64xf32>
    %468 = math.tanh %467 : vector<16x64xf32>
    %cst_198 = arith.constant 1.000000e+00 : f32
    %469 = vector.broadcast %cst_198 : f32 to vector<16x64xf32>
    %470 = arith.addf %469, %468 : vector<16x64xf32>
    %471 = arith.mulf %462, %470 : vector<16x64xf32>
    %c1_199 = arith.constant 1 : index
    %c0_200 = arith.constant 0 : index
    %c0_201 = arith.constant 0 : index
    %472 = vector.load %arg18[%c1_199, %c0_200, %c0_201] : memref<2x64x32xf32, #tpu.memory_space<vmem>>, vector<1x64x32xf32>
    %473 = vector.shape_cast %472 : vector<1x64x32xf32> to vector<64x32xf32>
    %cst_202 = arith.constant dense<0.000000e+00> : vector<16x32xf32>
    %474 = tpu.matmul %471, %473, %cst_202 {dimension_numbers = #tpu.dot_dimension_numbers<[1], [0], [0], [1], [0, 0, 1, 1], [], []>} : vector<16x64xf32>, vector<64x32xf32>, vector<16x32xf32> -> vector<16x32xf32>
    %c1_203 = arith.constant 1 : index
    %c0_204 = arith.constant 0 : index
    %c0_205 = arith.constant 0 : index
    %475 = vector.load %arg19[%c1_203, %c0_204, %c0_205] : memref<2x1x32xf32, #tpu.memory_space<vmem>>, vector<1x1x32xf32>
    %476 = vector.shape_cast %475 : vector<1x1x32xf32> to vector<1x32xf32>
    %477 = vector.broadcast %476 : vector<1x32xf32> to vector<16x32xf32>
    %478 = arith.addf %474, %477 : vector<16x32xf32>
    %479 = arith.addf %478, %451 : vector<16x32xf32>
    %c1_206 = arith.constant 1 : index
    %c0_207 = arith.constant 0 : index
    %c0_208 = arith.constant 0 : index
    %480 = vector.load %arg20[%c1_206, %c0_207, %c0_208] : memref<2x1x32xf32, #tpu.memory_space<vmem>>, vector<1x1x32xf32>
    %481 = vector.shape_cast %480 : vector<1x1x32xf32> to vector<1x32xf32>
    %c1_209 = arith.constant 1 : index
    %c0_210 = arith.constant 0 : index
    %c0_211 = arith.constant 0 : index
    %482 = vector.load %arg21[%c1_209, %c0_210, %c0_211] : memref<2x1x32xf32, #tpu.memory_space<vmem>>, vector<1x1x32xf32>
    %483 = vector.shape_cast %482 : vector<1x1x32xf32> to vector<1x32xf32>
    %cst_212 = arith.constant dense<0.000000e+00> : vector<16xf32>
    %484 = vector.multi_reduction <add>, %479, %cst_212 [1] : vector<16x32xf32> to vector<16xf32>
    %485 = vector.shape_cast %484 : vector<16xf32> to vector<16x1xf32>
    %cst_213 = arith.constant 3.200000e+01 : f32
    %486 = vector.broadcast %cst_213 : f32 to vector<16x1xf32>
    %487 = arith.divf %485, %486 : vector<16x1xf32>
    %488 = vector.broadcast %487 : vector<16x1xf32> to vector<16x32xf32>
    %489 = arith.subf %479, %488 : vector<16x32xf32>
    %490 = arith.mulf %489, %489 : vector<16x32xf32>
    %cst_214 = arith.constant dense<0.000000e+00> : vector<16xf32>
    %491 = vector.multi_reduction <add>, %490, %cst_214 [1] : vector<16x32xf32> to vector<16xf32>
    %492 = vector.shape_cast %491 : vector<16xf32> to vector<16x1xf32>
    %cst_215 = arith.constant 3.200000e+01 : f32
    %493 = vector.broadcast %cst_215 : f32 to vector<16x1xf32>
    %494 = arith.divf %492, %493 : vector<16x1xf32>
    %cst_216 = arith.constant 9.99999996E-13 : f32
    %495 = vector.broadcast %cst_216 : f32 to vector<16x1xf32>
    %496 = arith.addf %494, %495 : vector<16x1xf32>
    %497 = math.rsqrt %496 : vector<16x1xf32>
    %498 = vector.broadcast %497 : vector<16x1xf32> to vector<16x32xf32>
    %499 = arith.mulf %489, %498 : vector<16x32xf32>
    %500 = vector.broadcast %481 : vector<1x32xf32> to vector<16x32xf32>
    %501 = arith.mulf %499, %500 : vector<16x32xf32>
    %502 = vector.broadcast %483 : vector<1x32xf32> to vector<16x32xf32>
    %503 = arith.addf %501, %502 : vector<16x32xf32>
    %504 = vector.extract_strided_slice %503 {offsets = [0, 0], sizes = [1, 32], strides = [1, 1]} : vector<16x32xf32> to vector<1x32xf32>
    %505 = vector.extract_strided_slice %503 {offsets = [8, 0], sizes = [1, 32], strides = [1, 1]} : vector<16x32xf32> to vector<1x32xf32>
    %506 = tpu.concatenate %504, %505 in 0 : vector<1x32xf32>, vector<1x32xf32> -> vector<2x32xf32>
    %c0_217 = arith.constant 0 : index
    %c0_218 = arith.constant 0 : index
    %507 = vector.load %arg22[%c0_217, %c0_218] : memref<2x32xf32, #tpu.memory_space<vmem>>, vector<2x32xf32>
    tpu.vector_store %arg22[%c0_217, %c0_218], %506 {strides = array<i32>} : memref<2x32xf32, #tpu.memory_space<vmem>>, vector<2x32xf32>,
    return
  }
}

</mosaic_0001>

<bundles_post_ra>
// kernel: bert_forward.1
= control target key start
LH: loop header
LB: loop body
LE: loop exit
PB: predicated region body
PF: predicated region fallthrough
CT: control target
= control target key end

     0   :  { %s3449_s0 = inlined_call_operand.vmem [shape: s32[2,8], index: 0, kind: input, shape index: {}]   ;;  %s3450_s1 = inlined_call_operand.vmem [shape: s32[2,8], index: 1, kind: input, shape index: {}]   ;;  %s3451_s2 = inlined_call_operand.vmem [shape: f32[128,32], index: 2, kind: input, shape index: {}]   ;;  %s3452_s3 = inlined_call_operand.vmem [shape: f32[8,32], index: 3, kind: input, shape index: {}]   ;;  %s3453_s4 = inlined_call_operand.vmem [shape: f32[1,32], index: 4, kind: input, shape index: {}]   ;;  %s3454_s5 = inlined_call_operand.hbm [shape: f32[1,32], index: 5, kind: input, shape index: {}]   ;;  %s3455_s6 = inlined_call_operand.vmem [shape: f32[2,32,32], index: 6, kind: input, shape index: {}]   ;;  %s3456_s7 = inlined_call_operand.vmem [shape: f32[2,32,32], index: 7, kind: input, shape index: {}]   ;;  %s3457_s8 = inlined_call_operand.vmem [shape: f32[2,32,32], index: 8, kind: input, shape index: {}]   ;;  %s3458_s9 = inlined_call_operand.hbm [shape: f32[2,1,32], index: 9, kind: input, shape index: {}]   ;;  %s3459_s10 = inlined_call_operand.hbm [shape: f32[2,1,32], index: 10, kind: input, shape index: {}]   ;;  %s3460_s11 = inlined_call_operand.hbm [shape: f32[2,1,32], index: 11, kind: input, shape index: {}]   ;;  %s3461_s12 = inlined_call_operand.vmem [shape: f32[2,32,32], index: 12, kind: input, shape index: {}]   ;;  %s3462_s13 = inlined_call_operand.hbm [shape: f32[2,1,32], index: 13, kind: input, shape index: {}]   ;;  %s3463_s14 = inlined_call_operand.hbm [shape: f32[2,1,32], index: 14, kind: input, shape index: {}]   ;;  %s3464_s15 = inlined_call_operand.hbm [shape: f32[2,1,32], index: 15, kind: input, shape index: {}]   ;;  %s3465_s16 = inlined_call_operand.vmem [shape: f32[2,32,64], index: 16, kind: input, shape index: {}]   ;;  %s3466_s17 = inlined_call_operand.hbm [shape: f32[2,1,64], index: 17, kind: input, shape index: {}]   ;;  %s3467_s18 = inlined_call_operand.vmem [shape: f32[2,64,32], index: 18, kind: input, shape index: {}]   ;;  %s3468_s19 = inlined_call_operand.hbm [shape: f32[2,1,32], index: 19, kind: input, shape index: {}]   ;;  %s3469_s20 = inlined_call_operand.hbm [shape: f32[2,1,32], index: 20, kind: input, shape index: {}]   ;;  %s3470_s21 = inlined_call_operand.hbm [shape: f32[2,1,32], index: 21, kind: input, shape index: {}]   ;;  %s3471_s22 = inlined_call_operand.hbm [shape: f32[2,32], index: 22, kind: output, shape index: {}]  }
   0x1   :  { %3474 = sst [smem:[#allocation28_spill]] %s3449_s0 }
   0x2   :  { %3475 = sst [smem:[#allocation29_spill]] %s3450_s1 }
   0x3   :  { %3476 = sst [smem:[#allocation30_spill]] %s3451_s2 }
   0x4   :  { %3477 = sst [smem:[#allocation31_spill]] %s3452_s3 }
   0x5   :  { %3478 = sst [smem:[#allocation32_spill]] %s3453_s4 }
   0x6   :  { %3479 = sst [smem:[#allocation33_spill]] %s3454_s5 }
   0x7   :  { %3480 = sst [smem:[#allocation34_spill]] %s3455_s6 }
   0x8   :  { %27 = vsyncpa [#allocation3], 0 }
   0x9   :  { %28 = vsyncpa [#allocation6], 0 }
   0xa   :  { %29 = vsyncpa [#allocation9], 0 }
   0xb   :  { %30 = vsyncpa [#allocation12], 0 }
   0xc   :  { %31 = vsyncpa [#allocation15], 0 }
   0xd   :  { %32 = vsyncpa [#allocation18], 0  ;;  %s65_s29 = sshll.u32 %s3458_s9, 4  ;;  %s66_s29 = int_to_ptr.hbm [resolvable:$true] %s65_s29 }
   0xe   :  { %33 = vsyncpa [#allocation4], 0  ;;  %s2720_s30 = smov [#allocation5]   ;;  %s91_s1 = sshll.u32 %s3460_s11, 4  ;;  %s92_s1 = int_to_ptr.hbm [resolvable:$true] %s91_s1 }
   0xf   :  { %s67_s4 = sshll.u32 %s2720_s30, 4  ;;  %s2721_s5 = smov 16   ;;  %s68_s4 = int_to_ptr.vmem [resolvable:$true] %s67_s4 }
  0x10   :  { %s2722_s24 = smov 1   ;;  %s2723_s6 = smov [#allocation8]  }
  0x11   :  { %73 = dma.hbm_to_vmem [thread:$0]  %s66_s29, 32, %s68_s4, [#allocation6], %s2721_s5, %s2721_s5, %s2722_s24  }
  0x12   :  { %s93_s25 = sshll.u32 %s2723_s6, 4  ;;  %s119_s2 = sshll.u32 %s3463_s14, 4  ;;  %s94_s25 = int_to_ptr.vmem [resolvable:$true] %s93_s25  ;;  %s120_s2 = int_to_ptr.hbm [resolvable:$true] %s119_s2 }
  0x13   :  { %99 = dma.hbm_to_vmem [thread:$0]  %s92_s1, 32, %s94_s25, [#allocation9], %s2721_s5, %s2721_s5, %s2722_s24  }
  0x14   :  { %s147_s3 = sshll.u32 %s3466_s17, 4  ;;  %s2724_s28 = smov [#allocation11]   ;;  %s148_s3 = int_to_ptr.hbm [resolvable:$true] %s147_s3 }
  0x15   :  { %s121_s30 = sshll.u32 %s2724_s28, 4  ;;  %s2725_s29 = smov [#allocation14]   ;;  %s122_s30 = int_to_ptr.vmem [resolvable:$true] %s121_s30 }
  0x16   :  { %127 = dma.hbm_to_vmem [thread:$0]  %s120_s2, 32, %s122_s30, [#allocation12], %s2721_s5, %s2721_s5, %s2722_s24  }
  0x17   :  { %s149_s14 = sshll.u32 %s2725_s29, 4  ;;  %s175_s23 = sshll.u32 %s3469_s20, 4  ;;  %s150_s14 = int_to_ptr.vmem [resolvable:$true] %s149_s14  ;;  %s176_s23 = int_to_ptr.hbm [resolvable:$true] %s175_s23 }
  0x18   :  { %155 = dma.hbm_to_vmem [thread:$0]  %s148_s3, 32, %s150_s14, [#allocation15], %s2721_s5, %s2721_s5, %s2722_s24  }
  0x19   :  { %s3481_s6 = sld [smem:[#allocation33_spill]]  ;;  %s2726_s26 = smov [#allocation17]  }
  0x1a   :  { %s177_s9 = sshll.u32 %s2726_s26, 4  ;;  %s2727_s2 = smov [#allocation2]   ;;  %s178_s9 = int_to_ptr.vmem [resolvable:$true] %s177_s9 }
  0x1b   :  { %183 = dma.hbm_to_vmem [thread:$0]  %s176_s23, 32, %s178_s9, [#allocation18], %s2721_s5, %s2721_s5, %s2722_s24  }
  0x1c   :  { %s51_s20 = sshll.u32 %s2727_s2, 4  ;;  %s78_s28 = sshll.u32 %s3459_s10, 4  ;;  %s52_s20 = int_to_ptr.vmem [resolvable:$true] %s51_s20  ;;  %s79_s28 = int_to_ptr.hbm [resolvable:$true] %s78_s28 }
  0x1d   :  { %s106_s29 = sshll.u32 %s3462_s13, 4  ;;  %s2728_s14 = smov [#allocation7]   ;;  %s107_s29 = int_to_ptr.hbm [resolvable:$true] %s106_s29 }
  0x1e   :  { %s80_s4 = sshll.u32 %s2728_s14, 4  ;;  %s2729_s0 = smov [#allocation10]   ;;  %s81_s4 = int_to_ptr.vmem [resolvable:$true] %s80_s4 }
  0x1f   :  { %s49_s25 = sshll.u32 %s3481_s6, 4  ;;  %s108_s23 = sshll.u32 %s2729_s0, 4  ;;  %s50_s25 = int_to_ptr.hbm [resolvable:$true] %s49_s25  ;;  %s109_s23 = int_to_ptr.vmem [resolvable:$true] %s108_s23 }
  0x20   :  { %54 = dma.hbm_to_vmem [thread:$0]  %s50_s25, 16, %s52_s20, [#allocation3]  }
  0x21   :  { %86 = dma.hbm_to_vmem [thread:$0]  %s79_s28, 32, %s81_s4, [#allocation6], %s2721_s5, %s2721_s5, %s2722_s24  }
  0x22   :  { %s132_s10 = sshll.u32 %s3464_s15, 4  ;;  %s162_s25 = sshll.u32 %s3468_s19, 4  ;;  %s133_s10 = int_to_ptr.hbm [resolvable:$true] %s132_s10  ;;  %s163_s25 = int_to_ptr.hbm [resolvable:$true] %s162_s25 }
  0x23   :  { %114 = dma.hbm_to_vmem [thread:$0]  %s107_s29, 32, %s109_s23, [#allocation9], %s2721_s5, %s2721_s5, %s2722_s24  }
  0x24   :  { %s2730_s26 = smov [#allocation13]   ;;  %s2731_s2 = smov [#allocation16]  }
  0x25   :  { %s134_s9 = sshll.u32 %s2730_s26, 4  ;;  %s164_s15 = sshll.u32 %s2731_s2, 4  ;;  %s135_s9 = int_to_ptr.vmem [resolvable:$true] %s134_s9  ;;  %s165_s15 = int_to_ptr.vmem [resolvable:$true] %s164_s15 }
  0x26   :  { %140 = dma.hbm_to_vmem [thread:$0]  %s133_s10, 32, %s135_s9, [#allocation12], %s2721_s5, %s2721_s5, %s2722_s24  }
  0x27   :  { %s188_s27 = sshll.u32 %s3470_s21, 4  ;;  %s2732_s19 = smov [#allocation19]   ;;  %s189_s27 = int_to_ptr.hbm [resolvable:$true] %s188_s27 }
  0x28   :  { %170 = dma.hbm_to_vmem [thread:$0]  %s163_s25, 32, %s165_s15, [#allocation15], %s2721_s5, %s2721_s5, %s2722_s24  }
  0x29   :  { %s190_s28 = sshll.u32 %s2732_s19, 4  ;;  %s191_s28 = int_to_ptr.vmem [resolvable:$true] %s190_s28 }
  0x2a   :  { %196 = dma.hbm_to_vmem [thread:$0]  %s189_s27, 32, %s191_s28, [#allocation18], %s2721_s5, %s2721_s5, %s2722_s24  }
  0x2b   :  { %2706 = dma.done.wait [#allocation3], 16  }
  0x2c   :  { %2707 = vsyncadd [#allocation3], 4294967280 }
  0x2d   :  { %2708 = dma.done.wait [#allocation6], 64  }
  0x2e   :  { %2709 = vsyncadd [#allocation6], 4294967232 }
  0x2f   :  { %2710 = dma.done.wait [#allocation9], 64  }
  0x30   :  { %2711 = vsyncadd [#allocation9], 4294967232 }
  0x31   :  { %2712 = dma.done.wait [#allocation12], 64  }
  0x32   :  { %2713 = vsyncadd [#allocation12], 4294967232 }
  0x33   :  { %2714 = dma.done.wait [#allocation15], 64  }
  0x34   :  { %2715 = vsyncadd [#allocation15], 4294967232 }
  0x35   :  { %2716 = dma.done.wait [#allocation18], 64  }
  0x36   :  { %2717 = vsyncadd [#allocation18], 4294967232  ;;  %v242_v0 = vlaneseq  ;;  %s3482_s30 = sld [smem:[#allocation28_spill]]  ;;  %v2733_v23 = vmov 1.0   ;;  %vm306_vm2 = vcmask 261120   ;;  %v2734_v32 = vmov 32.0  }
  0x37   :  { %s3483_s14 = sld [smem:[#allocation30_spill]]  ;;  %2324 = vrcp.f32 %v2734_v32  ;;  %v412_v50 = vld [vmem:[%s3456_s7 + $0x18] sm:$0xff]  ;;  %v411_v52 = vld [vmem:[%s3456_s7 + $0x10] sm:$0xff]  ;;  %v410_v54 = vld [vmem:[%s3456_s7 + $0x8] sm:$0xff]  ;;  %vm471_vm10 = vcmask 64512   ;;  %s2735_s11 = smov 120  }
  0x38   :  { %v246_v1 = vshrl.u32 %v242_v0, 7  ;;  %v243_v21 = vand.u32 127, %v242_v0  ;;  %s3484_s26 = sld [smem:[#allocation31_spill]]  ;;  %429 = vmatpush.msra.mxu3 %v412_v50  ;;  %v409_v56 = vld [vmem:[%s3456_s7] sm:$0xff]  ;;  %v443_v60 = vld [vmem:[%s3457_s8 + $0x18] sm:$0xff]  ;;  %v442_v61 = vld [vmem:[%s3457_s8 + $0x10] sm:$0xff] }
  0x39   :  { %s3485_s2 = sld [smem:[#allocation34_spill]]  ;;  %v441_v62 = vld [vmem:[%s3457_s8 + $0x8] sm:$0xff]  ;;  %s2736_s27 = smov 112   ;;  %vm734_vm11 = vcmask 130048   ;;  %vm736_vm12 = vcmask 195584  }
  0x3a   :  { %2296 = vset.pattern.permute.xlu0 %v246_v1  ;;  %430 = vmatpush.msra.mxu3 %v411_v52  ;;  %v440_v1 = vld [vmem:[%s3457_s8] sm:$0xff]  ;;  %s3486_s20 = sld [smem:[#allocation32_spill]]  ;;  %s2737_s19 = smov 104  }
  0x3b   :  { %s3487_s3 = sld [smem:[#allocation29_spill]]  ;;  %s2739_s24 = smov 24  }
  0x3c   :  { %v241_v2 = vld [vmem:[%s3482_s30] sm:$0x3]  ;;  %431 = vmatpush.msra.mxu3 %v410_v54  ;;  %s2738_s30 = smov 8  }
  0x3d   :  { %v279_v3 = vld [vmem:[%s3483_s14 + $0x78] sm:$0xff]  ;;  %v278_v4 = vld [vmem:[%s3483_s14 + $0x70] sm:$0xff]  ;;  %v244_v5 = vperm.slane %v241_v2, 0  ;;  %v277_v6 = vld [vmem:[%s3483_s14 + $0x68] sm:$0xff]  ;;  %v251_v8 = vperm.slane %v241_v2, 1  ;;  %v2325_v33 = vpop.eup %2324 }
  0x3e   :  { %281 = vmatpush.msra.mxu0 %v279_v3  ;;  %v276_v7 = vld [vmem:[%s3483_s14 + $0x60] sm:$0xff]  ;;  %v275_v9 = vld [vmem:[%s3483_s14 + $0x58] sm:$0xff]  ;;  %v274_v10 = vld [vmem:[%s3483_s14 + $0x50] sm:$0xff]  ;;  %v314_v34 = vmul.f32 32.0, %v2325_v33  ;;  %vm318_vm3 = vweird.f32 %v2325_v33  ;;  %432 = vmatpush.msra.mxu3 %v409_v56 }
  0x3f   :  { %v273_v11 = vld [vmem:[%s3483_s14 + $0x48] sm:$0xff]  ;;  %v272_v12 = vld [vmem:[%s3483_s14 + $0x40] sm:$0xff]  ;;  %v271_v13 = vld [vmem:[%s3483_s14 + $0x38] sm:$0xff] }
  0x40   :  { %282 = vmatpush.msra.mxu0 %v278_v4  ;;  %v270_v14 = vld [vmem:[%s3483_s14 + $0x30] sm:$0xff]  ;;  %v269_v15 = vld [vmem:[%s3483_s14 + $0x28] sm:$0xff]  ;;  %v268_v16 = vld [vmem:[%s3483_s14 + $0x20] sm:$0xff]  ;;  %v315_v35 = vsub.f32 1.0, %v314_v34  ;;  %460 = vmatpush.msrb.mxu3 %v443_v60 }
  0x41   :  { %v267_v17 = vld [vmem:[%s3483_s14 + $0x18] sm:$0xff]  ;;  %v266_v18 = vld [vmem:[%s3483_s14 + $0x10] sm:$0xff]  ;;  %v265_v19 = vld [vmem:[%s3483_s14 + $0x8] sm:$0xff] }
  0x42   :  { %249 = vperm.xlu0 %2296, %v244_v5   ;;  %283 = vmatpush.msra.mxu0 %v277_v6  ;;  %v264_v20 = vld [vmem:[%s3483_s14] sm:$0xff]  ;;  %v316_v36 = vmul.f32 %v2325_v33, %v315_v35  ;;  %v375_v49 = vld [vmem:[%s3485_s2 + $0x18] sm:$0xff]  ;;  %v374_v51 = vld [vmem:[%s3485_s2 + $0x10] sm:$0xff] }
  0x43   :  { %v280_v25 = vld [vmem:[%s3484_s26] sm:$0xff]  ;;  %398 = vmatpush.msra.mxu1 %v375_v49  ;;  %v373_v53 = vld [vmem:[%s3485_s2 + $0x8] sm:$0xff]  ;;  %461 = vmatpush.msrb.mxu3 %v442_v61 }
  0x44   :  { %284 = vmatpush.msra.mxu0 %v276_v7  ;;  %v317_v37 = vadd.f32 %v2325_v33, %v316_v36  ;;  %v372_v55 = vld [vmem:[%s3485_s2] sm:$0xff] }
  0x45   :  { %399 = vmatpush.msra.mxu1 %v374_v51  ;;  %462 = vmatpush.msrb.mxu3 %v441_v62  ;;  %v3051_v34 = vld [vmem:[#allocation8] ss:$0 sm:$0xff] }
  0x46   :  { %285 = vmatpush.msra.mxu0 %v275_v9  ;;  %v2975_v38 = vsel %vm318_vm3, %v2325_v33, %v317_v37 }
  0x47   :  { %400 = vmatpush.msra.mxu1 %v373_v53  ;;  %463 = vmatpush.msrb.mxu3 %v440_v1 }
  0x48   :  { %286 = vmatpush.msra.mxu0 %v274_v10 }
  0x49   :  { %401 = vmatpush.msra.mxu1 %v372_v55 }
  0x4a   :  { %256 = vperm.xlu0 %2296, %v251_v8   ;;  %287 = vmatpush.msra.mxu0 %v273_v11  ;;  %v2302_v11 = vld [vmem:[%s3486_s20] ss:$0 sm:$0xff] }
  0x4c   :  { %288 = vmatpush.msra.mxu0 %v272_v12 }
  0x4e   :  { %289 = vmatpush.msra.mxu0 %v271_v13 }
  0x50   :  { %290 = vmatpush.msra.mxu0 %v270_v14 }
  0x52   :  { %291 = vmatpush.msra.mxu0 %v269_v15  ;;  %v2303_v15 = vld [vmem:[#allocation2] ss:$0 sm:$0xff] }
  0x54   :  { %292 = vmatpush.msra.mxu0 %v268_v16 }
  0x56   :  { %293 = vmatpush.msra.mxu0 %v267_v17 }
  0x58   :  { %294 = vmatpush.msra.mxu0 %v266_v18 }
  0x5a   :  { %295 = vmatpush.msra.mxu0 %v265_v19 }
  0x5c   :  { %296 = vmatpush.msra.mxu0 %v264_v20 }
  0xb4   :  { %v250_v22 = vpop.permute.xlu0 %249 }
  0xb5   :  { %vm258_vm0 = vcmp.eq.s32.totalorder %v250_v22, %v243_v21 }
  0xb6   :  { %2173 = vmatmul.msk.f32.vlgmr.msra.gmra.mxu0 %vm258_vm0, %v2733_v23  ;;  %vm1164_vm0 = vcmask 523264  }
  0xbc   :  { %v257_v24 = vpop.permute.xlu0 %256 }
  0xbd   :  { %vm259_vm1 = vcmp.eq.s32.totalorder %v257_v24, %v243_v21 }
  0xbe   :  { %2174 = vmatmul.msk.f32.gmra.mxu0 %vm259_vm1, %v2733_v23 }
 0x133   :  { %v298_v26 = vpop.f32.mrf.mxu0 }
 0x134   :  { %v299_v27 = vadd.f32 %v298_v26, %v280_v25  ;;  %v2305_v26 = vld [vmem:[#allocation7] ss:$0 sm:$0xff] }
 0x136   :  { %v307_v28 = vsel %vm306_vm2, %v299_v27, 0.0 }
 0x137   :  { %308 = vadd.xlane.f32.xlu1 %v307_v28 }
 0x13b   :  { %v301_v29 = vpop.f32.mrf.mxu0 }
 0x13c   :  { %v302_v30 = vadd.f32 %v301_v29, %v280_v25 }
 0x13e   :  { %v310_v31 = vsel %vm306_vm2, %v302_v30, 0.0 }
 0x13f   :  { %311 = vadd.xlane.f32.xlu2 %v310_v31 }
 0x1aa   :  { %v309_v39 = vpop.xlane.xlu1 %308 }
 0x1ab   :  { %v320_v40 = vmul.f32 %v2975_v38, %v309_v39 }
 0x1ad   :  { %v322_v41 = vsub.f32 %v299_v27, %v320_v40  ;;  %v2304_v27 = vld [vmem:[#allocation5] ss:$0 sm:$0xff]  ;;  %v368_v40 = vld [vmem:[%s3487_s3] sm:$0x3] }
 0x1af   :  { %v324_v42 = vmul.f32 %v322_v41, %v322_v41 }
 0x1b1   :  { %v326_v43 = vsel %vm306_vm2, %v324_v42, 0.0  ;;  %v369_v42 = vcvt.s32.f32 %v368_v40 }
 0x1b2   :  { %327 = vadd.xlane.f32.xlu1 %v326_v43  ;;  %v312_v44 = vpop.xlane.xlu2 %311 }
 0x1b3   :  { %v321_v45 = vmul.f32 %v2975_v38, %v312_v44  ;;  %v370_v44 = vsub.f32 1.0, %v369_v42 }
 0x1b5   :  { %v2980_v46 = vsub.f32 %v302_v30, %v321_v45  ;;  %v3065_v45 = vmul.f32 -1e+09, %v370_v44 }
 0x1b7   :  { %v325_v47 = vmul.f32 %v2980_v46, %v2980_v46 }
 0x1b9   :  { %v329_v48 = vsel %vm306_vm2, %v325_v47, 0.0 }
 0x1ba   :  { %330 = vadd.xlane.f32.xlu2 %v329_v48 }
 0x225   :  { %v328_v57 = vpop.xlane.xlu1 %327 }
 0x226   :  { %v332_v58 = vmul.f32 %v328_v57, %v2975_v38 }
 0x228   :  { %v334_v59 = vadd.f32 1e-12, %v332_v58 }
 0x22a   :  { %2326 = vrsqrt.f32 %v334_v59  ;;  %vm342_vm5 = vweird.f32 %v334_v59 }
 0x22d   :  { %v331_v63 = vpop.xlane.xlu2 %330 }
 0x22e   :  { %v333_v0 = vmul.f32 %v331_v63, %v2975_v38 }
 0x230   :  { %v2327_v2 = vpop.eup %2326  ;;  %v335_v3 = vadd.f32 1e-12, %v333_v0 }
 0x231   :  { %v337_v4 = vmul.f32 %v2327_v2, %v334_v59  ;;  %vm343_vm4 = vweird.f32 %v2327_v2 }
 0x232   :  { %2328 = vrsqrt.f32 %v335_v3  ;;  %vm344_vm6 = vmor %vm342_vm5, %vm343_vm4  ;;  %vm352_vm8 = vweird.f32 %v335_v3 }
 0x233   :  { %v338_v5 = vmul.f32 %v2327_v2, %v337_v4 }
 0x235   :  { %v339_v6 = vmul.f32 0.5, %v338_v5 }
 0x237   :  { %v340_v7 = vsub.f32 1.5, %v339_v6 }
 0x238   :  { %v2329_v8 = vpop.eup %2328 }
 0x239   :  { %v341_v9 = vmul.f32 %v2327_v2, %v340_v7  ;;  %v347_v10 = vmul.f32 %v2329_v8, %v335_v3  ;;  %vm353_vm7 = vweird.f32 %v2329_v8 }
 0x23a   :  { %vm354_vm9 = vmor %vm352_vm8, %vm353_vm7 }
 0x23b   :  { %v345_v12 = vsel %vm344_vm6, %v2327_v2, %v341_v9  ;;  %v348_v13 = vmul.f32 %v2329_v8, %v347_v10 }
 0x23c   :  { %v356_v14 = vmul.f32 %v345_v12, %v322_v41 }
 0x23d   :  { %v349_v16 = vmul.f32 0.5, %v348_v13 }
 0x23e   :  { %v361_v17 = vmul.f32 %v2302_v11, %v356_v14 }
 0x23f   :  { %v350_v18 = vsub.f32 1.5, %v349_v16 }
 0x240   :  { %v3026_v19 = vadd.f32 %v2303_v15, %v361_v17 }
 0x241   :  { %v351_v20 = vmul.f32 %v2329_v8, %v350_v18 }
 0x242   :  { %2175 = vmatmul.msk.f32.vlgmr.msra.gmra.mxu1 %vm306_vm2, %v3026_v19  ;;  %2177 = vmatmul.msk.f32.vlgmr.msra.gmra.mxu3 %vm306_vm2, %v3026_v19 }
 0x243   :  { %v355_v21 = vsel %vm354_vm9, %v2329_v8, %v351_v20 }
 0x244   :  { %v357_v22 = vmul.f32 %v355_v21, %v2980_v46  ;;  %v3068_v46 = vperm.slane %v3065_v45, 0 }
 0x246   :  { %v362_v23 = vmul.f32 %v2302_v11, %v357_v22 }
 0x248   :  { %v3033_v24 = vadd.f32 %v2303_v15, %v362_v23 }
 0x24a   :  { %2176 = vmatmul.msk.f32.gmra.mxu1 %vm306_vm2, %v3033_v24  ;;  %2178 = vmatmul.msk.f32.gmra.mxu3 %vm306_vm2, %v3033_v24 }
 0x252   :  { %2179 = vmatmul.msk.f32.vlgmr.msrb.gmra.mxu3 %vm306_vm2, %v3026_v19 }
 0x25a   :  { %2180 = vmatmul.msk.f32.gmra.mxu3 %vm306_vm2, %v3033_v24 }
 0x2bf   :  { %v403_v25 = vpop.f32.mrf.mxu1 }
 0x2c0   :  { %v404_v32 = vadd.f32 %v2304_v27, %v403_v25  ;;  %v3108_v25 = vperm.slane %v3065_v45, 1 }
 0x2c5   :  { %v434_v28 = vpop.f32.mrf.mxu3 }
 0x2c6   :  { %v435_v29 = vadd.f32 %v2305_v26, %v434_v28 }
 0x2c7   :  { %v406_v30 = vpop.f32.mrf.mxu1 }
 0x2c8   :  { %v3043_v31 = vadd.f32 %v2304_v27, %v406_v30  ;;  %533 = vrot.lane.b32.xlu1 %v435_v29, %s2735_s11  ;;  %2181 = vmatpush.xpose.msk.msrb.mxu1 %vm471_vm10, %v435_v29 }
 0x2c9   :  { %597 = vrot.lane.b32.xlu2 %v435_v29, %s2736_s27 }
 0x2cb   :  { %2182 = vmatmul.msk.f32.vlgmr.msrb.gmra.mxu1 %vm471_vm10, %v404_v32 }
 0x2cd   :  { %v437_v33 = vpop.f32.mrf.mxu3 }
 0x2ce   :  { %v438_v36 = vadd.f32 %v2305_v26, %v437_v33 }
 0x2d0   :  { %595 = vrot.lane.b32.xlu1 %v404_v32, %s2736_s27 }
 0x2d1   :  { %531 = vrot.lane.b32.xlu2 %v404_v32, %s2735_s11 }
 0x2d5   :  { %v465_v35 = vpop.f32.mrf.mxu3 }
 0x2d6   :  { %v3054_v37 = vadd.f32 %v3051_v34, %v465_v35 }
 0x2d8   :  { %526 = vmatpush.msra.mxu2 %v3054_v37  ;;  %799 = vrot.lane.b32.xlu1 %v438_v36, %s2735_s11 }
 0x2d9   :  { %658 = vrot.lane.b32.xlu2 %v404_v32, %s2737_s19 }
 0x2dd   :  { %v3081_v53 = vpop.f32.mrf.mxu3 }
 0x2de   :  { %v469_v42 = vadd.f32 %v3051_v34, %v3081_v53 }
 0x323   :  { %v598_v39 = vpop.permute.xlu2 %597 }
 0x324   :  { %2187 = vmatpush.xpose.msk.msrb.mxu2 %vm471_vm10, %v598_v39 }
 0x32b   :  { %v532_v43 = vpop.permute.xlu2 %531 }
 0x333   :  { %v659_v3 = vpop.permute.xlu2 %658 }
 0x33a   :  { %v534_v41 = vpop.permute.xlu1 %533 }
 0x33b   :  { %2184 = vmatpush.xpose.msk.msra.mxu3 %vm471_vm10, %v534_v41 }
 0x33e   :  { %2185 = vmatmul.msk.f32.vlgmr.msra.gmra.mxu3 %vm471_vm10, %v532_v43 }
 0x342   :  { %v596_v63 = vpop.permute.xlu1 %595 }
 0x348   :  { %v495_v47 = vpop.f32.mrf.mxu1 }
 0x349   :  { %v498_v48 = vmul.f32 0.35355338, %v495_v47 }
 0x34a   :  { %v800_v9 = vpop.permute.xlu1 %799 }
 0x34b   :  { %v500_v49 = vadd.f32 %v3068_v46, %v498_v48 }
 0x34d   :  { %v501_v50 = vmul.f32 1.442695, %v500_v49 }
 0x34f   :  { %2330 = vpow2.f32 %v501_v50 }
 0x355   :  { %v2331_v51 = vpop.eup %2330 }
 0x356   :  { %v503_v52 = vsel %vm471_vm10, %v2331_v51, 0.0 }
 0x357   :  { %504 = vadd.xlane.f32.xlu0 %v503_v52 }
 0x36b   :  { %569 = vrot.lane.b32.xlu0 %v3054_v37, %s2735_s11 }
 0x373   :  { %632 = vrot.lane.b32.xlu0 %v3054_v37, %s2736_s27 }
 0x37b   :  { %660 = vrot.lane.b32.xlu0 %v435_v29, %s2737_s19 }
 0x383   :  { %797 = vrot.lane.b32.xlu0 %v3043_v31, %s2735_s11 }
 0x38b   :  { %863 = vrot.lane.b32.xlu0 %v438_v36, %s2736_s27 }
 0x393   :  { %926 = vrot.lane.b32.xlu0 %v438_v36, %s2737_s19 }
 0x3c1   :  { %v556_v54 = vpop.f32.mrf.mxu3 }
 0x3c2   :  { %v559_v55 = vmul.f32 0.35355338, %v556_v54 }
 0x3c4   :  { %v560_v56 = vadd.f32 %v559_v55, %v3068_v46 }
 0x3c6   :  { %v561_v57 = vmul.f32 1.442695, %v560_v56 }
 0x3c8   :  { %2332 = vpow2.f32 %v561_v57 }
 0x3ca   :  { %v505_v58 = vpop.xlane.xlu0 %504 }
 0x3cb   :  { %2334 = vrcp.f32 %v505_v58 }
 0x3ce   :  { %v2333_v59 = vpop.eup %2332 }
 0x3cf   :  { %v563_v60 = vsel %vm471_vm10, %v2333_v59, 0.0 }
 0x3d0   :  { %564 = vadd.xlane.f32.xlu2 %v563_v60 }
 0x3d1   :  { %v2335_v61 = vpop.eup %2334 }
 0x3d2   :  { %v507_v62 = vmul.f32 %v2335_v61, %v2331_v51 }
 0x3d4   :  { %2183 = vmatmul.msk.f32.vlgmr.msra.gmra.mxu2 %vm471_vm10, %v507_v62 }
 0x3dc   :  { %2188 = vmatmul.msk.f32.vlgmr.msrb.gmra.mxu2 %vm471_vm10, %v596_v63 }
 0x3dd   :  { %v570_v0 = vpop.permute.xlu0 %569 }
 0x3de   :  { %590 = vmatpush.msra.mxu1 %v570_v0 }
 0x3e5   :  { %v633_v1 = vpop.permute.xlu0 %632 }
 0x3e6   :  { %653 = vmatpush.msrb.mxu3 %v633_v1 }
 0x3e8   :  { %2193 = vmatpush.xpose.msk.msra.mxu3 %vm471_vm10, %v438_v36  ;;  %861 = vrot.lane.b32.xlu2 %v3043_v31, %s2736_s27 }
 0x3ed   :  { %v661_v2 = vpop.permute.xlu0 %660 }
 0x3ee   :  { %2190 = vmatpush.xpose.msk.msrb.mxu1 %vm471_vm10, %v661_v2  ;;  %v1005_v2 = vld [vmem:[%s3461_s12 + $0x18] sm:$0xff] }
 0x3f5   :  { %v798_v4 = vpop.permute.xlu0 %797 }
 0x3fd   :  { %v864_v7 = vpop.permute.xlu0 %863 }
 0x405   :  { %v927_v10 = vpop.permute.xlu0 %926 }
 0x443   :  { %v565_v5 = vpop.xlane.xlu2 %564 }
 0x444   :  { %2336 = vrcp.f32 %v565_v5  ;;  %v1003_v5 = vld [vmem:[%s3461_s12 + $0x8] sm:$0xff] }
 0x44a   :  { %v2337_v6 = vpop.eup %2336 }
 0x44b   :  { %v567_v8 = vmul.f32 %v2337_v6, %v2333_v59  ;;  %v862_v41 = vpop.permute.xlu2 %861 }
 0x44d   :  { %2186 = vmatmul.msk.f32.vlgmr.msra.gmra.mxu1 %vm471_vm10, %v567_v8 }
 0x44e   :  { %2196 = vmatpush.xpose.msk.msra.mxu1 %vm471_vm10, %v800_v9 }
 0x455   :  { %2191 = vmatmul.msk.f32.vlgmr.msrb.gmra.mxu1 %vm471_vm10, %v659_v3  ;;  %v1004_v3 = vld [vmem:[%s3461_s12 + $0x10] sm:$0xff] }
 0x456   :  { %2202 = vmatpush.xpose.msk.msrb.mxu1 %vm471_vm10, %v927_v10 }
 0x457   :  { %v3095_v11 = vpop.f32.mrf.mxu2 }
 0x45d   :  { %2197 = vmatmul.msk.f32.vlgmr.msra.gmra.mxu1 %vm471_vm10, %v798_v4 }
 0x45f   :  { %v620_v12 = vpop.f32.mrf.mxu2 }
 0x460   :  { %v623_v13 = vmul.f32 0.35355338, %v620_v12 }
 0x462   :  { %v624_v14 = vadd.f32 %v623_v13, %v3068_v46 }
 0x464   :  { %v625_v15 = vmul.f32 1.442695, %v624_v14 }
 0x466   :  { %2338 = vpow2.f32 %v625_v15 }
 0x46c   :  { %v2339_v16 = vpop.eup %2338 }
 0x46d   :  { %v627_v17 = vsel %vm471_vm10, %v2339_v16, 0.0 }
 0x46e   :  { %628 = vadd.xlane.f32.xlu1 %v627_v17 }
 0x487   :  { %924 = vrot.lane.b32.xlu1 %v3043_v31, %s2737_s19 }
 0x48f   :  { %695 = vrot.lane.b32.xlu1 %v3054_v37, %s2737_s19 }
 0x4ca   :  { %v3104_v18 = vpop.f32.mrf.mxu1 }
 0x4d2   :  { %v683_v20 = vpop.f32.mrf.mxu1 }
 0x4d3   :  { %v686_v21 = vmul.f32 0.35355338, %v683_v20 }
 0x4d5   :  { %v687_v22 = vadd.f32 %v686_v21, %v3068_v46 }
 0x4d7   :  { %v688_v23 = vmul.f32 1.442695, %v687_v22  ;;  %v1002_v22 = vld [vmem:[%s3461_s12] sm:$0xff] }
 0x4d9   :  { %2340 = vpow2.f32 %v688_v23 }
 0x4da   :  { %v822_v26 = vpop.f32.mrf.mxu1 }
 0x4db   :  { %v825_v27 = vmul.f32 0.35355338, %v822_v26 }
 0x4dd   :  { %v826_v28 = vadd.f32 %v825_v27, %v3108_v25 }
 0x4df   :  { %v2341_v29 = vpop.eup %2340  ;;  %v827_v30 = vmul.f32 1.442695, %v826_v28 }
 0x4e0   :  { %v690_v32 = vsel %vm471_vm10, %v2341_v29, 0.0 }
 0x4e1   :  { %2342 = vpow2.f32 %v827_v30  ;;  %v629_v33 = vpop.xlane.xlu1 %628  ;;  %691 = vadd.xlane.f32.xlu0 %v690_v32 }
 0x4e2   :  { %2344 = vrcp.f32 %v629_v33 }
 0x4e7   :  { %v3112_v35 = vpop.eup %2342 }
 0x4e8   :  { %v2345_v36 = vpop.eup %2344  ;;  %v829_v37 = vsel %vm471_vm10, %v3112_v35, 0.0 }
 0x4e9   :  { %v631_v39 = vmul.f32 %v2345_v36, %v2339_v16  ;;  %830 = vadd.xlane.f32.xlu1 %v829_v37  ;;  %v2307_v37 = vld [vmem:[#allocation10] ss:$0 sm:$0xff] }
 0x4eb   :  { %2189 = vmatmul.msk.f32.vlgmr.msrb.gmra.mxu3 %vm471_vm10, %v631_v39 }
 0x4ec   :  { %2199 = vmatpush.xpose.msk.msrb.mxu3 %vm471_vm10, %v864_v7 }
 0x4f3   :  { %2194 = vmatmul.msk.f32.vlgmr.msra.gmra.mxu3 %vm471_vm10, %v3043_v31 }
 0x4f4   :  { %1028 = vmatpush.msra.mxu3 %v1005_v2 }
 0x4f6   :  { %1029 = vmatpush.msra.mxu3 %v1004_v3  ;;  %v2308_v3 = vld [vmem:[#allocation11] ss:$0 sm:$0xff] }
 0x4f8   :  { %1030 = vmatpush.msra.mxu3 %v1003_v5 }
 0x4f9   :  { %v925_v40 = vpop.permute.xlu1 %924 }
 0x4fa   :  { %2203 = vmatmul.msk.f32.vlgmr.msrb.gmra.mxu1 %vm471_vm10, %v925_v40  ;;  %1031 = vmatpush.msra.mxu3 %v1002_v22  ;;  %v1153_v22 = vld [vmem:[%s3467_s18 + $0x8] sm:$0xff] }
 0x4fb   :  { %2200 = vmatmul.msk.f32.vlgmr.msrb.gmra.mxu3 %vm471_vm10, %v862_v41 }
 0x501   :  { %v696_v43 = vpop.permute.xlu1 %695 }
 0x502   :  { %716 = vmatpush.msra.mxu2 %v696_v43  ;;  %961 = vrot.lane.b32.xlu1 %v469_v42, %s2737_s19 }
 0x504   :  { %792 = vmatpush.msrb.mxu2 %v469_v42 }
 0x554   :  { %v692_v44 = vpop.xlane.xlu0 %691 }
 0x555   :  { %2346 = vrcp.f32 %v692_v44 }
 0x55b   :  { %v2347_v45 = vpop.eup %2346 }
 0x55c   :  { %v694_v47 = vmul.f32 %v2347_v45, %v2341_v29  ;;  %v831_v6 = vpop.xlane.xlu1 %830 }
 0x55e   :  { %2192 = vmatmul.msk.f32.vlgmr.msra.gmra.mxu2 %vm471_vm10, %v694_v47 }
 0x56e   :  { %v655_v31 = vpop.f32.mrf.mxu3 }
 0x574   :  { %v962_v12 = vpop.permute.xlu1 %961 }
 0x576   :  { %v761_v48 = vpop.f32.mrf.mxu3 }
 0x577   :  { %v764_v49 = vmul.f32 0.35355338, %v761_v48  ;;  %v949_v50 = vpop.f32.mrf.mxu1 }
 0x578   :  { %v952_v51 = vmul.f32 0.35355338, %v949_v50 }
 0x579   :  { %v766_v52 = vadd.f32 %v3108_v25, %v764_v49 }
 0x57a   :  { %v953_v34 = vadd.f32 %v952_v51, %v3108_v25 }
 0x57b   :  { %v767_v53 = vmul.f32 1.442695, %v766_v52 }
 0x57c   :  { %v954_v54 = vmul.f32 1.442695, %v953_v34 }
 0x57d   :  { %2348 = vpow2.f32 %v767_v53 }
 0x57e   :  { %2350 = vpow2.f32 %v954_v54  ;;  %v886_v55 = vpop.f32.mrf.mxu3 }
 0x57f   :  { %v889_v56 = vmul.f32 0.35355338, %v886_v55  ;;  %v1100_v55 = vld [vmem:[%s3465_s16 + $0x18] sm:$0xff] }
 0x581   :  { %v890_v57 = vadd.f32 %v889_v56, %v3108_v25  ;;  %v1099_v56 = vld [vmem:[%s3465_s16 + $0x10] sm:$0xff] }
 0x583   :  { %v2349_v58 = vpop.eup %2348  ;;  %v891_v59 = vmul.f32 1.442695, %v890_v57  ;;  %v1098_v57 = vld [vmem:[%s3465_s16 + $0x8] sm:$0xff] }
 0x584   :  { %v2351_v60 = vpop.eup %2350  ;;  %v769_v61 = vsel %vm471_vm10, %v2349_v58, 0.0 }
 0x585   :  { %2352 = vpow2.f32 %v891_v59  ;;  %770 = vadd.xlane.f32.xlu2 %v769_v61  ;;  %v956_v62 = vsel %vm471_vm10, %v2351_v60, 0.0 }
 0x586   :  { %957 = vadd.xlane.f32.xlu0 %v956_v62 }
 0x58b   :  { %v2353_v63 = vpop.eup %2352 }
 0x58c   :  { %v893_v0 = vsel %vm471_vm10, %v2353_v63, 0.0 }
 0x58e   :  { %894 = vadd.xlane.f32.xlu0 %v893_v0 }
 0x59d   :  { %835 = vrot.lane.b32.xlu2 %v469_v42, %s2735_s11 }
 0x5a2   :  { %898 = vrot.lane.b32.xlu0 %v469_v42, %s2736_s27 }
 0x5a5   :  { %722 = vrot.lane.b32.xlu2 %v3104_v18, %s2738_s30 }
 0x5ad   :  { %726 = vrot.lane.b32.xlu2 %v655_v31, %s2721_s5 }
 0x5e1   :  { %v718_v1 = vpop.f32.mrf.mxu2 }
 0x5e2   :  { %730 = vrot.lane.b32.xlu0 %v718_v1, %s2739_s24 }
 0x5f8   :  { %v771_v4 = vpop.xlane.xlu2 %770 }
 0x5f9   :  { %2354 = vrcp.f32 %v771_v4  ;;  %v958_v7 = vpop.xlane.xlu0 %957 }
 0x5fa   :  { %2356 = vrcp.f32 %v831_v6  ;;  %v2309_v6 = vld [vmem:[#allocation13] ss:$0 sm:$0xff] }
 0x5fb   :  { %2358 = vrcp.f32 %v958_v7 }
 0x5ff   :  { %v2355_v8 = vpop.eup %2354 }
 0x600   :  { %v773_v9 = vmul.f32 %v2355_v8, %v2349_v58  ;;  %v836_v10 = vpop.permute.xlu2 %835  ;;  %v2357_v13 = vpop.eup %2356 }
 0x601   :  { %856 = vmatpush.msra.mxu2 %v836_v10  ;;  %v833_v14 = vmul.f32 %v2357_v13, %v3112_v35  ;;  %v895_v15 = vpop.xlane.xlu0 %894  ;;  %v2359_v16 = vpop.eup %2358 }
 0x602   :  { %2195 = vmatmul.msk.f32.vlgmr.msrb.gmra.mxu2 %vm471_vm10, %v773_v9  ;;  %2360 = vrcp.f32 %v895_v15  ;;  %v960_v17 = vmul.f32 %v2359_v16, %v2351_v60  ;;  %v1159_v15 = vld [vmem:[%s3467_s18 + $0x38] sm:$0xff]  ;;  %v1158_v16 = vld [vmem:[%s3467_s18 + $0x30] sm:$0xff] }
 0x603   :  { %982 = vmatpush.msrb.mxu2 %v962_v12  ;;  %1179 = vmatpush.msra.mxu1 %v1159_v15  ;;  %v2213_v15 = vld [vmem:[%s3485_s2 + $0x30] sm:$0xff] }
 0x605   :  { %1180 = vmatpush.msra.mxu1 %v1158_v16  ;;  %v2219_v16 = vld [vmem:[%s3456_s7 + $0x30] sm:$0xff] }
 0x608   :  { %v2361_v18 = vpop.eup %2360  ;;  %v723_v23 = vpop.permute.xlu2 %722 }
 0x609   :  { %v897_v21 = vmul.f32 %v2361_v18, %v2353_v63  ;;  %v733_v27 = vsel %vm471_vm10, %v3095_v11, %v723_v23  ;;  %v1156_v18 = vld [vmem:[%s3467_s18 + $0x20] sm:$0xff] }
 0x60a   :  { %2198 = vmatmul.msk.f32.vlgmr.msra.gmra.mxu2 %vm471_vm10, %v833_v14  ;;  %v1152_v23 = vld [vmem:[%s3467_s18] sm:$0xff] }
 0x610   :  { %v727_v26 = vpop.permute.xlu2 %726 }
 0x611   :  { %v735_v28 = vsel %vm734_vm11, %v733_v27, %v727_v26  ;;  %v2310_v26 = vld [vmem:[#allocation14] ss:$0 sm:$0xff] }
 0x612   :  { %2204 = vmatmul.msk.f32.vlgmr.msrb.gmra.mxu2 %vm471_vm10, %v960_v17  ;;  %v1157_v17 = vld [vmem:[%s3467_s18 + $0x28] sm:$0xff] }
 0x613   :  { %1181 = vmatpush.msra.mxu1 %v1157_v17  ;;  %v2225_v17 = vld [vmem:[%s3457_s8 + $0x30] sm:$0xff] }
 0x614   :  { %v899_v20 = vpop.permute.xlu0 %898 }
 0x615   :  { %919 = vmatpush.msrb.mxu0 %v899_v20  ;;  %1182 = vmatpush.msra.mxu1 %v1156_v18  ;;  %v1155_v20 = vld [vmem:[%s3467_s18 + $0x18] sm:$0xff]  ;;  %v2212_v18 = vld [vmem:[%s3485_s2 + $0x28] sm:$0xff] }
 0x616   :  { %2201 = vmatmul.msk.f32.vlgmr.msrb.gmra.mxu0 %vm471_vm10, %v897_v21  ;;  %v1154_v21 = vld [vmem:[%s3467_s18 + $0x10] sm:$0xff] }
 0x617   :  { %1123 = vmatpush.msra.mxu0 %v1100_v55  ;;  %1183 = vmatpush.msra.mxu1 %v1155_v20  ;;  %v2218_v20 = vld [vmem:[%s3456_s7 + $0x28] sm:$0xff] }
 0x619   :  { %1124 = vmatpush.msra.mxu0 %v1099_v56  ;;  %1184 = vmatpush.msra.mxu1 %v1154_v21  ;;  %v2224_v21 = vld [vmem:[%s3457_s8 + $0x28] sm:$0xff] }
 0x61b   :  { %1125 = vmatpush.msra.mxu0 %v1098_v57  ;;  %1185 = vmatpush.msra.mxu1 %v1153_v22  ;;  %v2211_v22 = vld [vmem:[%s3485_s2 + $0x20] sm:$0xff] }
 0x61d   :  { %1186 = vmatpush.msra.mxu1 %v1152_v23  ;;  %v2217_v23 = vld [vmem:[%s3456_s7 + $0x20] sm:$0xff] }
 0x654   :  { %v731_v29 = vpop.permute.xlu0 %730 }
 0x655   :  { %v737_v30 = vsel %vm736_vm12, %v735_v28, %v731_v29 }
 0x656   :  { %2205 = vmatmul.msk.f32.vlgmr.msra.gmra.mxu3 %vm306_vm2, %v737_v30 }
 0x685   :  { %v794_v32 = vpop.f32.mrf.mxu2 }
 0x68d   :  { %v858_v33 = vpop.f32.mrf.mxu2 }
 0x68e   :  { %988 = vrot.lane.b32.xlu1 %v858_v33, %s2738_s30 }
 0x693   :  { %v921_v35 = vpop.f32.mrf.mxu0 }
 0x694   :  { %992 = vrot.lane.b32.xlu2 %v921_v35, %s2721_s5 }
 0x695   :  { %v984_v36 = vpop.f32.mrf.mxu2 }
 0x696   :  { %996 = vrot.lane.b32.xlu0 %v984_v36, %s2739_s24 }
 0x6d9   :  { %v1033_v39 = vpop.f32.mrf.mxu3 }
 0x6da   :  { %v1034_v11 = vadd.f32 %v2307_v37, %v1033_v39 }
 0x6dc   :  { %v1039_v40 = vadd.f32 %v1034_v11, %v3026_v19 }
 0x6de   :  { %v1043_v41 = vsel %vm306_vm2, %v1039_v40, 0.0 }
 0x6df   :  { %1044 = vadd.xlane.f32.xlu1 %v1043_v41 }
 0x6ee   :  { %v993_v44 = vpop.permute.xlu2 %992 }
 0x700   :  { %v989_v42 = vpop.permute.xlu1 %988 }
 0x701   :  { %v999_v43 = vsel %vm471_vm10, %v794_v32, %v989_v42 }
 0x702   :  { %v1000_v47 = vsel %vm734_vm11, %v999_v43, %v993_v44 }
 0x708   :  { %v997_v45 = vpop.permute.xlu0 %996 }
 0x709   :  { %v1001_v31 = vsel %vm736_vm12, %v1000_v47, %v997_v45 }
 0x70a   :  { %2206 = vmatmul.msk.f32.gmra.mxu3 %vm306_vm2, %v1001_v31 }
 0x752   :  { %v1045_v48 = vpop.xlane.xlu1 %1044 }
 0x753   :  { %v1049_v49 = vmul.f32 %v1045_v48, %v2975_v38 }
 0x755   :  { %v1051_v50 = vsub.f32 %v1039_v40, %v1049_v49 }
 0x757   :  { %v1053_v51 = vmul.f32 %v1051_v50, %v1051_v50 }
 0x759   :  { %v1055_v19 = vsel %vm306_vm2, %v1053_v51, 0.0 }
 0x75a   :  { %1056 = vadd.xlane.f32.xlu0 %v1055_v19 }
 0x78d   :  { %v1036_v52 = vpop.f32.mrf.mxu3 }
 0x78e   :  { %v1037_v34 = vadd.f32 %v2307_v37, %v1036_v52  ;;  %v2311_v52 = vld [vmem:[#allocation16] ss:$0 sm:$0xff] }
 0x790   :  { %v1040_v53 = vadd.f32 %v1037_v34, %v3033_v24  ;;  %v1097_v24 = vld [vmem:[%s3465_s16] sm:$0xff] }
 0x791   :  { %1126 = vmatpush.msra.mxu0 %v1097_v24 }
 0x792   :  { %v1046_v54 = vsel %vm306_vm2, %v1040_v53, 0.0 }
 0x793   :  { %1047 = vadd.xlane.f32.xlu2 %v1046_v54 }
 0x7cd   :  { %v1057_v58 = vpop.xlane.xlu0 %1056 }
 0x7ce   :  { %v1061_v59 = vmul.f32 %v1057_v58, %v2975_v38 }
 0x7d0   :  { %v1063_v60 = vadd.f32 1e-12, %v1061_v59 }
 0x7d2   :  { %2362 = vrsqrt.f32 %v1063_v60  ;;  %vm1071_vm14 = vweird.f32 %v1063_v60 }
 0x7d8   :  { %v2363_v61 = vpop.eup %2362 }
 0x7d9   :  { %v1066_v62 = vmul.f32 %v2363_v61, %v1063_v60  ;;  %vm1072_vm13 = vweird.f32 %v2363_v61 }
 0x7da   :  { %vm1073_vm15 = vmor %vm1071_vm14, %vm1072_vm13 }
 0x7db   :  { %v1067_v63 = vmul.f32 %v2363_v61, %v1066_v62 }
 0x7dd   :  { %v1068_v0 = vmul.f32 0.5, %v1067_v63 }
 0x7df   :  { %v1069_v1 = vsub.f32 1.5, %v1068_v0 }
 0x7e1   :  { %v1070_v2 = vmul.f32 %v2363_v61, %v1069_v1 }
 0x7e3   :  { %v1074_v4 = vsel %vm1073_vm15, %v2363_v61, %v1070_v2 }
 0x7e4   :  { %v1085_v5 = vmul.f32 %v1074_v4, %v1051_v50 }
 0x7e6   :  { %v1090_v7 = vmul.f32 %v2308_v3, %v1085_v5 }
 0x7e8   :  { %v1095_v8 = vadd.f32 %v2309_v6, %v1090_v7 }
 0x7ea   :  { %2207 = vmatmul.msk.f32.vlgmr.msra.gmra.mxu0 %vm306_vm2, %v1095_v8 }
 0x806   :  { %v1048_v9 = vpop.xlane.xlu2 %1047 }
 0x807   :  { %v1050_v10 = vmul.f32 %v1048_v9, %v2975_v38 }
 0x809   :  { %v1052_v12 = vsub.f32 %v1040_v53, %v1050_v10 }
 0x80b   :  { %v1054_v13 = vmul.f32 %v1052_v12, %v1052_v12 }
 0x80d   :  { %v1058_v14 = vsel %vm306_vm2, %v1054_v13, 0.0  ;;  %v2220_v13 = vld [vmem:[%s3456_s7 + $0x38] sm:$0xff] }
 0x80e   :  { %1059 = vadd.xlane.f32.xlu1 %v1058_v14  ;;  %v2226_v14 = vld [vmem:[%s3457_s8 + $0x38] sm:$0xff]  ;;  %1313 = vmatpush.msrb.mxu3 %v2220_v13 }
 0x80f   :  { %1346 = vmatpush.msrb.mxu0 %v2226_v14 }
 0x810   :  { %1314 = vmatpush.msrb.mxu3 %v2219_v16 }
 0x811   :  { %1347 = vmatpush.msrb.mxu0 %v2225_v17 }
 0x812   :  { %1315 = vmatpush.msrb.mxu3 %v2218_v20 }
 0x813   :  { %1348 = vmatpush.msrb.mxu0 %v2224_v21 }
 0x814   :  { %1316 = vmatpush.msrb.mxu3 %v2217_v23 }
 0x867   :  { %v1128_v27 = vpop.f32.mrf.mxu0 }
 0x868   :  { %v1129_v28 = vadd.f32 %v2310_v26, %v1128_v27 }
 0x86a   :  { %v1134_v29 = vmul.f32 %v1129_v28, %v1129_v28  ;;  %v1138_v37 = vmul.f32 0.5, %v1129_v28 }
 0x86c   :  { %v1136_v30 = vmul.f32 %v1134_v29, %v1129_v28 }
 0x86e   :  { %v1140_v32 = vmul.f32 0.044715, %v1136_v30 }
 0x870   :  { %v1142_v33 = vadd.f32 %v1140_v32, %v1129_v28 }
 0x872   :  { %v1144_v35 = vmul.f32 0.7978846, %v1142_v33 }
 0x874   :  { %2364 = vtanh.f32 %v1144_v35 }
 0x87a   :  { %v2365_v36 = vpop.eup %2364 }
 0x87b   :  { %v1148_v39 = vadd.f32 1.0, %v2365_v36 }
 0x87d   :  { %v1150_v11 = vmul.f32 %v1148_v39, %v1138_v37  ;;  %v2312_v39 = vld [vmem:[#allocation17] ss:$0 sm:$0xff] }
 0x87f   :  { %2209 = vmatmul.msk.f32.vlgmr.msra.gmra.mxu1 %vm1164_vm0, %v1150_v11 }
 0x881   :  { %v1060_v40 = vpop.xlane.xlu1 %1059 }
 0x882   :  { %v1062_v41 = vmul.f32 %v1060_v40, %v2975_v38 }
 0x884   :  { %v1064_v42 = vadd.f32 1e-12, %v1062_v41  ;;  %v2313_v41 = vld [vmem:[#allocation19] ss:$0 sm:$0xff] }
 0x886   :  { %2366 = vrsqrt.f32 %v1064_v42  ;;  %vm1081_vm3 = vweird.f32 %v1064_v42 }
 0x88c   :  { %v2367_v43 = vpop.eup %2366 }
 0x88d   :  { %v1076_v44 = vmul.f32 %v2367_v43, %v1064_v42  ;;  %vm1082_vm1 = vweird.f32 %v2367_v43 }
 0x88e   :  { %vm1083_vm4 = vmor %vm1081_vm3, %vm1082_vm1 }
 0x88f   :  { %v1077_v45 = vmul.f32 %v2367_v43, %v1076_v44 }
 0x891   :  { %v1078_v47 = vmul.f32 0.5, %v1077_v45 }
 0x893   :  { %v1079_v31 = vsub.f32 1.5, %v1078_v47 }
 0x895   :  { %v1080_v48 = vmul.f32 %v2367_v43, %v1079_v31 }
 0x897   :  { %v1084_v49 = vsel %vm1083_vm4, %v2367_v43, %v1080_v48 }
 0x898   :  { %v1086_v50 = vmul.f32 %v1084_v49, %v1052_v12  ;;  %v2214_v12 = vld [vmem:[%s3485_s2 + $0x38] sm:$0xff]  ;;  %v3268_v49 = vld [vmem:[#allocation8 + $0x1] ss:$0 sm:$0xff] }
 0x899   :  { %1280 = vmatpush.msra.mxu2 %v2214_v12 }
 0x89a   :  { %v1091_v51 = vmul.f32 %v2308_v3, %v1086_v50 }
 0x89b   :  { %1281 = vmatpush.msra.mxu2 %v2213_v15 }
 0x89c   :  { %v1096_v19 = vadd.f32 %v2309_v6, %v1091_v51 }
 0x89d   :  { %1282 = vmatpush.msra.mxu2 %v2212_v18 }
 0x89e   :  { %2208 = vmatmul.msk.f32.gmra.mxu0 %vm306_vm2, %v1096_v19 }
 0x89f   :  { %1283 = vmatpush.msra.mxu2 %v2211_v22 }
 0x8fc   :  { %v1188_v34 = vpop.f32.mrf.mxu1 }
 0x8fd   :  { %v1189_v53 = vadd.f32 %v2311_v52, %v1188_v34 }
 0x8ff   :  { %v1194_v54 = vadd.f32 %v1189_v53, %v1095_v8 }
 0x901   :  { %v1198_v55 = vsel %vm306_vm2, %v1194_v54, 0.0 }
 0x902   :  { %1199 = vadd.xlane.f32.xlu2 %v1198_v55 }
 0x91b   :  { %v1131_v56 = vpop.f32.mrf.mxu0 }
 0x91c   :  { %v1132_v57 = vadd.f32 %v2310_v26, %v1131_v56  ;;  %v2223_v26 = vld [vmem:[%s3457_s8 + $0x20] sm:$0xff] }
 0x91d   :  { %1349 = vmatpush.msrb.mxu0 %v2223_v26 }
 0x91e   :  { %v1135_v24 = vmul.f32 %v1132_v57, %v1132_v57  ;;  %v1139_v63 = vmul.f32 0.5, %v1132_v57 }
 0x920   :  { %v1137_v58 = vmul.f32 %v1135_v24, %v1132_v57 }
 0x922   :  { %v1141_v59 = vmul.f32 0.044715, %v1137_v58 }
 0x924   :  { %v1143_v60 = vadd.f32 %v1141_v59, %v1132_v57 }
 0x926   :  { %v1145_v61 = vmul.f32 0.7978846, %v1143_v60 }
 0x928   :  { %2368 = vtanh.f32 %v1145_v61 }
 0x92e   :  { %v2369_v62 = vpop.eup %2368 }
 0x92f   :  { %v1149_v0 = vadd.f32 1.0, %v2369_v62 }
 0x931   :  { %v1151_v1 = vmul.f32 %v1149_v0, %v1139_v63 }
 0x933   :  { %2210 = vmatmul.msk.f32.gmra.mxu1 %vm1164_vm0, %v1151_v1 }
 0x975   :  { %v1200_v2 = vpop.xlane.xlu2 %1199 }
 0x976   :  { %v1204_v3 = vmul.f32 %v1200_v2, %v2975_v38 }
 0x978   :  { %v1206_v4 = vsub.f32 %v1194_v54, %v1204_v3 }
 0x97a   :  { %v1208_v5 = vmul.f32 %v1206_v4, %v1206_v4 }
 0x97c   :  { %v1210_v6 = vsel %vm306_vm2, %v1208_v5, 0.0 }
 0x97d   :  { %1211 = vadd.xlane.f32.xlu1 %v1210_v6 }
 0x9b0   :  { %v1191_v7 = vpop.f32.mrf.mxu1 }
 0x9b1   :  { %v1192_v8 = vadd.f32 %v2311_v52, %v1191_v7  ;;  %v2316_v52 = vld [vmem:[#allocation7 + $0x1] ss:$0 sm:$0xff] }
 0x9b3   :  { %v1195_v9 = vadd.f32 %v1192_v8, %v1096_v19  ;;  %v2315_v19 = vld [vmem:[#allocation5 + $0x1] ss:$0 sm:$0xff] }
 0x9b5   :  { %v1201_v10 = vsel %vm306_vm2, %v1195_v9, 0.0 }
 0x9b6   :  { %1202 = vadd.xlane.f32.xlu0 %v1201_v10 }
 0x9f0   :  { %v1212_v27 = vpop.xlane.xlu1 %1211 }
 0x9f1   :  { %v1216_v28 = vmul.f32 %v1212_v27, %v2975_v38 }
 0x9f3   :  { %v1218_v29 = vadd.f32 1e-12, %v1216_v28 }
 0x9f5   :  { %2370 = vrsqrt.f32 %v1218_v29  ;;  %vm1226_vm6 = vweird.f32 %v1218_v29 }
 0x9fb   :  { %v2371_v30 = vpop.eup %2370 }
 0x9fc   :  { %v1221_v32 = vmul.f32 %v2371_v30, %v1218_v29  ;;  %vm1227_vm5 = vweird.f32 %v2371_v30 }
 0x9fd   :  { %vm1228_vm7 = vmor %vm1226_vm6, %vm1227_vm5 }
 0x9fe   :  { %v1222_v33 = vmul.f32 %v2371_v30, %v1221_v32 }
 0xa00   :  { %v1223_v35 = vmul.f32 0.5, %v1222_v33 }
 0xa02   :  { %v1224_v36 = vsub.f32 1.5, %v1223_v35 }
 0xa04   :  { %v1225_v37 = vmul.f32 %v2371_v30, %v1224_v36 }
 0xa06   :  { %v1229_v11 = vsel %vm1228_vm7, %v2371_v30, %v1225_v37  ;;  %vm2145_vm7 = vcmask 1040384  }
 0xa07   :  { %v1240_v40 = vmul.f32 %v1229_v11, %v1206_v4 }
 0xa09   :  { %v1245_v42 = vmul.f32 %v2312_v39, %v1240_v40 }
 0xa0b   :  { %v3258_v43 = vadd.f32 %v2313_v41, %v1245_v42 }
 0xa0d   :  { %2215 = vmatmul.msk.f32.vlgmr.msra.gmra.mxu2 %vm306_vm2, %v3258_v43  ;;  %2221 = vmatmul.msk.f32.vlgmr.msrb.gmra.mxu3 %vm306_vm2, %v3258_v43 }
 0xa0e   :  { %2227 = vmatmul.msk.f32.vlgmr.msrb.gmra.mxu0 %vm306_vm2, %v3258_v43 }
 0xa29   :  { %v1203_v44 = vpop.xlane.xlu0 %1202 }
 0xa2a   :  { %v1205_v45 = vmul.f32 %v1203_v44, %v2975_v38 }
 0xa2c   :  { %v1207_v47 = vsub.f32 %v1195_v9, %v1205_v45 }
 0xa2e   :  { %v1209_v31 = vmul.f32 %v1207_v47, %v1207_v47 }
 0xa30   :  { %v1213_v48 = vsel %vm306_vm2, %v1209_v31, 0.0 }
 0xa31   :  { %1214 = vadd.xlane.f32.xlu2 %v1213_v48 }
 0xa8b   :  { %v1351_v50 = vpop.f32.mrf.mxu0 }
 0xa8c   :  { %v3271_v51 = vadd.f32 %v3268_v49, %v1351_v50 }
 0xa8e   :  { %1410 = vmatpush.msrb.mxu1 %v3271_v51 }
 0xa90   :  { %v1285_v34 = vpop.f32.mrf.mxu2  ;;  %v1318_v53 = vpop.f32.mrf.mxu3 }
 0xa91   :  { %v1286_v54 = vadd.f32 %v2315_v19, %v1285_v34  ;;  %v1319_v55 = vadd.f32 %v2316_v52, %v1318_v53 }
 0xa93   :  { %1544 = vrot.lane.b32.xlu2 %v1319_v55, %s2737_s19  ;;  %1417 = vrot.lane.b32.xlu0 %v1319_v55, %s2735_s11 }
 0xa94   :  { %2229 = vmatpush.xpose.msk.msrb.mxu2 %vm471_vm10, %v1319_v55  ;;  %1415 = vrot.lane.b32.xlu1 %v1286_v54, %s2735_s11 }
 0xa9b   :  { %1542 = vrot.lane.b32.xlu0 %v1286_v54, %s2737_s19 }
 0xa9c   :  { %1481 = vrot.lane.b32.xlu1 %v1319_v55, %s2736_s27 }
 0xaa4   :  { %v1215_v56 = vpop.xlane.xlu2 %1214 }
 0xaa5   :  { %v1217_v57 = vmul.f32 %v1215_v56, %v2975_v38 }
 0xaa7   :  { %v1219_v24 = vadd.f32 1e-12, %v1217_v57 }
 0xaa9   :  { %2372 = vrsqrt.f32 %v1219_v24  ;;  %vm1236_vm9 = vweird.f32 %v1219_v24 }
 0xaaf   :  { %v2373_v58 = vpop.eup %2372 }
 0xab0   :  { %v1231_v59 = vmul.f32 %v2373_v58, %v1219_v24  ;;  %vm1237_vm8 = vweird.f32 %v2373_v58 }
 0xab1   :  { %vm1238_vm13 = vmor %vm1236_vm9, %vm1237_vm8  ;;  %vm2147_vm8 = vcmask 254976  }
 0xab2   :  { %v1232_v60 = vmul.f32 %v2373_v58, %v1231_v59 }
 0xab4   :  { %v1233_v61 = vmul.f32 0.5, %v1232_v60 }
 0xab6   :  { %v1234_v62 = vsub.f32 1.5, %v1233_v61 }
 0xab8   :  { %v1235_v63 = vmul.f32 %v2373_v58, %v1234_v62 }
 0xaba   :  { %v1239_v0 = vsel %vm1238_vm13, %v2373_v58, %v1235_v63 }
 0xabb   :  { %v1241_v1 = vmul.f32 %v1239_v0, %v1207_v47 }
 0xabd   :  { %v1246_v2 = vmul.f32 %v2312_v39, %v1241_v1 }
 0xabf   :  { %v3281_v3 = vadd.f32 %v2313_v41, %v1246_v2 }
 0xac1   :  { %2216 = vmatmul.msk.f32.gmra.mxu2 %vm306_vm2, %v3281_v3  ;;  %2222 = vmatmul.msk.f32.gmra.mxu3 %vm306_vm2, %v3281_v3 }
 0xac2   :  { %2228 = vmatmul.msk.f32.gmra.mxu0 %vm306_vm2, %v3281_v3 }
 0xac9   :  { %2230 = vmatmul.msk.f32.vlgmr.msrb.gmra.mxu2 %vm471_vm10, %v1286_v54 }
 0xaed   :  { %v1545_v5 = vpop.permute.xlu2 %1544 }
 0xb05   :  { %v1418_v4 = vpop.permute.xlu0 %1417 }
 0xb06   :  { %v1416_v6 = vpop.permute.xlu1 %1415  ;;  %2232 = vmatpush.xpose.msk.msra.mxu2 %vm471_vm10, %v1418_v4 }
 0xb09   :  { %2233 = vmatmul.msk.f32.vlgmr.msra.gmra.mxu2 %vm471_vm10, %v1416_v6 }
 0xb0a   :  { %2238 = vmatpush.xpose.msk.msrb.mxu2 %vm471_vm10, %v1545_v5 }
 0xb0d   :  { %v1543_v8 = vpop.permute.xlu0 %1542 }
 0xb0e   :  { %v1482_v7 = vpop.permute.xlu1 %1481 }
 0xb0f   :  { %2235 = vmatpush.xpose.msk.msra.mxu0 %vm471_vm10, %v1482_v7 }
 0xb11   :  { %2239 = vmatmul.msk.f32.vlgmr.msrb.gmra.mxu2 %vm471_vm10, %v1543_v8 }
 0xb3f   :  { %v1354_v37 = vpop.f32.mrf.mxu0 }
 0xb40   :  { %v3315_v39 = vadd.f32 %v3268_v49, %v1354_v37 }
 0xb42   :  { %v2297_v11 = vpack.i.bf16 %v3315_v39, %v3271_v51 }
 0xb44   :  { %v1288_v9 = vpop.f32.mrf.mxu2  ;;  %v1321_v10 = vpop.f32.mrf.mxu3 }
 0xb45   :  { %v1289_v12 = vadd.f32 %v2315_v19, %v1288_v9  ;;  %v1322_v13 = vadd.f32 %v2316_v52, %v1321_v10 }
 0xb47   :  { %1807 = vrot.lane.b32.xlu1 %v1322_v13, %s2737_s19  ;;  %1680 = vrot.lane.b32.xlu0 %v1322_v13, %s2735_s11 }
 0xb48   :  { %2241 = vmatpush.xpose.msk.msrb.mxu0 %vm471_vm10, %v1322_v13  ;;  %1678 = vrot.lane.b32.xlu2 %v1289_v12, %s2735_s11 }
 0xb4c   :  { %v1380_v14 = vpop.f32.mrf.mxu2 }
 0xb4d   :  { %v1383_v15 = vmul.f32 0.35355338, %v1380_v14 }
 0xb4f   :  { %1479 = vrot.lane.b32.xlu0 %v1286_v54, %s2736_s27  ;;  %1742 = vrot.lane.b32.xlu1 %v1289_v12, %s2736_s27  ;;  %v1384_v16 = vadd.f32 %v1383_v15, %v3068_v46 }
 0xb50   :  { %1805 = vrot.lane.b32.xlu2 %v1289_v12, %s2737_s19 }
 0xb51   :  { %v1385_v17 = vmul.f32 1.442695, %v1384_v16 }
 0xb53   :  { %2374 = vpow2.f32 %v1385_v17 }
 0xb57   :  { %1744 = vrot.lane.b32.xlu0 %v1322_v13, %s2736_s27  ;;  %1516 = vrot.lane.b32.xlu1 %v3271_v51, %s2736_s27 }
 0xb59   :  { %v2375_v18 = vpop.eup %2374 }
 0xb5a   :  { %v1387_v20 = vsel %vm471_vm10, %v2375_v18, 0.0 }
 0xb81   :  { %1388 = vadd.xlane.f32.xlu0 %v1387_v20 }
 0xb8c   :  { %v1440_v21 = vpop.f32.mrf.mxu2 }
 0xb8d   :  { %v1443_v22 = vmul.f32 0.35355338, %v1440_v21 }
 0xb8f   :  { %v1444_v23 = vadd.f32 %v1443_v22, %v3068_v46 }
 0xb91   :  { %v1445_v26 = vmul.f32 1.442695, %v1444_v23 }
 0xb93   :  { %2376 = vpow2.f32 %v1445_v26 }
 0xb94   :  { %v1567_v27 = vpop.f32.mrf.mxu2 }
 0xb95   :  { %v1570_v28 = vmul.f32 0.35355338, %v1567_v27 }
 0xb97   :  { %v1571_v29 = vadd.f32 %v1570_v28, %v3068_v46 }
 0xb99   :  { %v2377_v30 = vpop.eup %2376  ;;  %v1572_v32 = vmul.f32 1.442695, %v1571_v29 }
 0xb9a   :  { %v1447_v33 = vsel %vm471_vm10, %v2377_v30, 0.0 }
 0xb9b   :  { %2378 = vpow2.f32 %v1572_v32  ;;  %1448 = vadd.xlane.f32.xlu2 %v1447_v33 }
 0xba1   :  { %v3310_v35 = vpop.eup %2378 }
 0xba2   :  { %v1574_v36 = vsel %vm471_vm10, %v3310_v35, 0.0  ;;  %v1679_v42 = vpop.permute.xlu2 %1678 }
 0xba3   :  { %1575 = vadd.xlane.f32.xlu1 %v1574_v36 }
 0xbaa   :  { %v1806_v47 = vpop.permute.xlu2 %1805 }
 0xbb3   :  { %2298 = vrot.lane.b32.xlu2 %v2297_v11, %s2735_s11 }
 0xbb9   :  { %v1808_v40 = vpop.permute.xlu1 %1807  ;;  %v1681_v41 = vpop.permute.xlu0 %1680 }
 0xbba   :  { %2244 = vmatpush.xpose.msk.msra.mxu2 %vm471_vm10, %v1681_v41 }
 0xbbd   :  { %2245 = vmatmul.msk.f32.vlgmr.msra.gmra.mxu2 %vm471_vm10, %v1679_v42 }
 0xbbe   :  { %2250 = vmatpush.xpose.msk.msrb.mxu2 %vm471_vm10, %v1808_v40 }
 0xbc1   :  { %v1480_v44 = vpop.permute.xlu0 %1479  ;;  %v1743_v45 = vpop.permute.xlu1 %1742 }
 0xbc2   :  { %2236 = vmatmul.msk.f32.vlgmr.msra.gmra.mxu0 %vm471_vm10, %v1480_v44 }
 0xbc5   :  { %2251 = vmatmul.msk.f32.vlgmr.msrb.gmra.mxu2 %vm471_vm10, %v1806_v47 }
 0xbc9   :  { %v1745_v31 = vpop.permute.xlu0 %1744  ;;  %v1517_v48 = vpop.permute.xlu1 %1516 }
 0xbca   :  { %1537 = vmatpush.msra.mxu1 %v1517_v48  ;;  %2242 = vmatmul.msk.f32.vlgmr.msrb.gmra.mxu0 %vm471_vm10, %v1289_v12 }
 0xbcb   :  { %2247 = vmatpush.xpose.msk.msra.mxu0 %vm471_vm10, %v1745_v31 }
 0xbd2   :  { %2248 = vmatmul.msk.f32.vlgmr.msra.gmra.mxu0 %vm471_vm10, %v1743_v45 }
 0xbf4   :  { %v1389_v49 = vpop.xlane.xlu0 %1388 }
 0xbf5   :  { %2380 = vrcp.f32 %v1389_v49 }
 0xbfb   :  { %v2381_v50 = vpop.eup %2380 }
 0xbfc   :  { %v1391_v19 = vmul.f32 %v2381_v50, %v2375_v18 }
 0xbfe   :  { %2231 = vmatmul.msk.f32.vlgmr.msrb.gmra.mxu1 %vm471_vm10, %v1391_v19 }
 0xbff   :  { %1673 = vmatpush.msrb.mxu1 %v3315_v39 }
 0xc0e   :  { %v1449_v52 = vpop.xlane.xlu2 %1448 }
 0xc0f   :  { %2382 = vrcp.f32 %v1449_v52 }
 0xc15   :  { %v2383_v34 = vpop.eup %2382 }
 0xc16   :  { %v3330_v53 = vpop.permute.xlu2 %2298  ;;  %v1451_v55 = vmul.f32 %v2383_v34, %v2377_v30 }
 0xc17   :  { %v2300_v54 = vunpack.i.l.bf16 %v3330_v53 }
 0xc19   :  { %1474 = vmatpush.msra.mxu3 %v2300_v54  ;;  %v2255_v54 = vld [vmem:[%s3461_s12 + $0x30] sm:$0xff] }
 0xc1a   :  { %2234 = vmatmul.msk.f32.vlgmr.msra.gmra.mxu3 %vm471_vm10, %v1451_v55 }
 0xc3f   :  { %v1504_v56 = vpop.f32.mrf.mxu0 }
 0xc40   :  { %v1507_v57 = vmul.f32 0.35355338, %v1504_v56  ;;  %v1703_v24 = vpop.f32.mrf.mxu2  ;;  %v2254_v56 = vld [vmem:[%s3461_s12 + $0x28] sm:$0xff] }
 0xc41   :  { %v1706_v61 = vmul.f32 0.35355338, %v1703_v24  ;;  %v2253_v24 = vld [vmem:[%s3461_s12 + $0x20] sm:$0xff] }
 0xc42   :  { %v1508_v58 = vadd.f32 %v1507_v57, %v3068_v46 }
 0xc43   :  { %v1707_v5 = vadd.f32 %v1706_v61, %v3108_v25 }
 0xc44   :  { %v1509_v59 = vmul.f32 1.442695, %v1508_v58 }
 0xc45   :  { %v1708_v46 = vmul.f32 1.442695, %v1707_v5 }
 0xc46   :  { %2384 = vpow2.f32 %v1509_v59 }
 0xc47   :  { %v1643_v60 = vpop.f32.mrf.mxu0 }
 0xc48   :  { %v1646_v62 = vmul.f32 0.35355338, %v1643_v60  ;;  %v1830_v63 = vpop.f32.mrf.mxu2 }
 0xc49   :  { %v1833_v0 = vmul.f32 0.35355338, %v1830_v63 }
 0xc4a   :  { %v1647_v1 = vadd.f32 %v1646_v62, %v3108_v25 }
 0xc4b   :  { %v1834_v2 = vadd.f32 %v1833_v0, %v3108_v25 }
 0xc4c   :  { %v2385_v4 = vpop.eup %2384  ;;  %v1648_v6 = vmul.f32 1.442695, %v1647_v1 }
 0xc4d   :  { %v1835_v7 = vmul.f32 1.442695, %v1834_v2  ;;  %v1511_v8 = vsel %vm471_vm10, %v2385_v4, 0.0 }
 0xc4e   :  { %2386 = vpow2.f32 %v1648_v6  ;;  %1512 = vadd.xlane.f32.xlu0 %v1511_v8 }
 0xc4f   :  { %2388 = vpow2.f32 %v1835_v7  ;;  %v1767_v16 = vpop.f32.mrf.mxu0  ;;  %v2317_v7 = vld [vmem:[#allocation10 + $0x1] ss:$0 sm:$0xff] }
 0xc50   :  { %2390 = vpow2.f32 %v1708_v46  ;;  %v1770_v17 = vmul.f32 0.35355338, %v1767_v16 }
 0xc52   :  { %v1771_v18 = vadd.f32 %v1770_v17, %v3108_v25 }
 0xc54   :  { %v2387_v9 = vpop.eup %2386  ;;  %v1772_v20 = vmul.f32 1.442695, %v1771_v18 }
 0xc55   :  { %v2389_v10 = vpop.eup %2388  ;;  %v1650_v12 = vsel %vm471_vm10, %v2387_v9, 0.0 }
 0xc56   :  { %1651 = vadd.xlane.f32.xlu1 %v1650_v12  ;;  %v1837_v13 = vsel %vm471_vm10, %v2389_v10, 0.0  ;;  %v2391_v14 = vpop.eup %2390  ;;  %2392 = vpow2.f32 %v1772_v20 }
 0xc57   :  { %1838 = vadd.xlane.f32.xlu2 %v1837_v13  ;;  %v1710_v15 = vsel %vm471_vm10, %v2391_v14, 0.0 }
 0xc5c   :  { %v2393_v21 = vpop.eup %2392 }
 0xc5d   :  { %v1774_v22 = vsel %vm471_vm10, %v2393_v21, 0.0 }
 0xc5e   :  { %1711 = vadd.xlane.f32.xlu1 %v1710_v15 }
 0xc62   :  { %1579 = vrot.lane.b32.xlu0 %v3271_v51, %s2737_s19  ;;  %v1576_v51 = vpop.xlane.xlu1 %1575 }
 0xc77   :  { %1842 = vrot.lane.b32.xlu1 %v3315_v39, %s2737_s19 }
 0xc7b   :  { %v1412_v49 = vpop.f32.mrf.mxu1 }
 0xc7f   :  { %1779 = vrot.lane.b32.xlu1 %v3315_v39, %s2736_s27  ;;  %v2301_v39 = vunpack.i.h.bf16 %v3330_v53  ;;  %v2256_v53 = vld [vmem:[%s3461_s12 + $0x38] sm:$0xff] }
 0xc80   :  { %1911 = vmatpush.msrb.mxu0 %v2256_v53 }
 0xc82   :  { %1912 = vmatpush.msrb.mxu0 %v2255_v54 }
 0xc84   :  { %1913 = vmatpush.msrb.mxu0 %v2254_v56 }
 0xc86   :  { %1914 = vmatpush.msrb.mxu0 %v2253_v24 }
 0xc8c   :  { %1775 = vadd.xlane.f32.xlu0 %v1774_v22 }
 0xc9d   :  { %v1476_v23 = vpop.f32.mrf.mxu3 }
 0xc9e   :  { %1606 = vrot.lane.b32.xlu1 %v1476_v23, %s2738_s30 }
 0xcc1   :  { %v1513_v26 = vpop.xlane.xlu0 %1512 }
 0xcc2   :  { %2394 = vrcp.f32 %v1513_v26 }
 0xcc8   :  { %v2395_v27 = vpop.eup %2394 }
 0xcc9   :  { %v1515_v28 = vmul.f32 %v2395_v27, %v2385_v4  ;;  %v1652_v29 = vpop.xlane.xlu1 %1651  ;;  %v2261_v27 = vld [vmem:[%s3465_s16 + $0x30] sm:$0xff] }
 0xcca   :  { %2396 = vrcp.f32 %v1652_v29  ;;  %v1839_v41 = vpop.xlane.xlu2 %1838  ;;  %v2259_v29 = vld [vmem:[%s3465_s16 + $0x20] sm:$0xff] }
 0xccb   :  { %2398 = vrcp.f32 %v1576_v51  ;;  %2237 = vmatmul.msk.f32.vlgmr.msra.gmra.mxu1 %vm471_vm10, %v1515_v28  ;;  %v2260_v28 = vld [vmem:[%s3465_s16 + $0x28] sm:$0xff] }
 0xcd0   :  { %v2397_v25 = vpop.eup %2396 }
 0xcd1   :  { %v2399_v30 = vpop.eup %2398  ;;  %v1654_v32 = vmul.f32 %v2397_v25, %v2387_v9  ;;  %v1712_v33 = vpop.xlane.xlu1 %1711 }
 0xcd2   :  { %2400 = vrcp.f32 %v1712_v33  ;;  %v1578_v36 = vmul.f32 %v2399_v30, %v3310_v35 }
 0xcd3   :  { %2243 = vmatmul.msk.f32.vlgmr.msrb.gmra.mxu1 %vm471_vm10, %v1654_v32  ;;  %2402 = vrcp.f32 %v1839_v41  ;;  %v2318_v41 = vld [vmem:[#allocation11 + $0x1] ss:$0 sm:$0xff] }
 0xcd4   :  { %v1580_v37 = vpop.permute.xlu0 %1579 }
 0xcd5   :  { %1600 = vmatpush.msrb.mxu3 %v1580_v37 }
 0xcd6   :  { %2240 = vmatmul.msk.f32.vlgmr.msrb.gmra.mxu3 %vm471_vm10, %v1578_v36 }
 0xcd7   :  { %1737 = vmatpush.msra.mxu3 %v2301_v39 }
 0xcd8   :  { %v2401_v11 = vpop.eup %2400 }
 0xcd9   :  { %v1714_v40 = vmul.f32 %v2401_v11, %v2391_v14  ;;  %v2403_v42 = vpop.eup %2402 }
 0xcda   :  { %v1841_v44 = vmul.f32 %v2403_v42, %v2389_v10 }
 0xcde   :  { %2246 = vmatmul.msk.f32.vlgmr.msra.gmra.mxu3 %vm471_vm10, %v1714_v40 }
 0xce9   :  { %v1843_v45 = vpop.permute.xlu1 %1842 }
 0xcea   :  { %1863 = vmatpush.msrb.mxu3 %v1843_v45  ;;  %v2319_v45 = vld [vmem:[#allocation13 + $0x1] ss:$0 sm:$0xff] }
 0xceb   :  { %2252 = vmatmul.msk.f32.vlgmr.msrb.gmra.mxu3 %vm471_vm10, %v1841_v44 }
 0xcf1   :  { %v1780_v35 = vpop.permute.xlu1 %1779 }
 0xcf2   :  { %1800 = vmatpush.msra.mxu1 %v1780_v35 }
 0xcff   :  { %v1776_v47 = vpop.xlane.xlu0 %1775 }
 0xd00   :  { %2404 = vrcp.f32 %v1776_v47 }
 0xd06   :  { %v2405_v31 = vpop.eup %2404 }
 0xd07   :  { %v1778_v48 = vmul.f32 %v2405_v31, %v2393_v21 }
 0xd09   :  { %2249 = vmatmul.msk.f32.vlgmr.msra.gmra.mxu1 %vm471_vm10, %v1778_v48 }
 0xd10   :  { %v1607_v58 = vpop.permute.xlu1 %1606 }
 0xd11   :  { %v1617_v60 = vsel %vm471_vm10, %v1412_v49, %v1607_v58  ;;  %v2272_v58 = vld [vmem:[%s3467_s18 + $0x78] sm:$0xff] }
 0xd12   :  { %2067 = vmatpush.msra.mxu2 %v2272_v58 }
 0xd48   :  { %v1539_v50 = vpop.f32.mrf.mxu1 }
 0xd49   :  { %1610 = vrot.lane.b32.xlu2 %v1539_v50, %s2721_s5 }
 0xd50   :  { %v1675_v34 = vpop.f32.mrf.mxu1 }
 0xd59   :  { %v1602_v19 = vpop.f32.mrf.mxu3 }
 0xd5a   :  { %1614 = vrot.lane.b32.xlu1 %v1602_v19, %s2739_s24 }
 0xd61   :  { %v1739_v52 = vpop.f32.mrf.mxu3 }
 0xd62   :  { %1869 = vrot.lane.b32.xlu0 %v1739_v52, %s2738_s30  ;;  %s2156_s30 = sshll.u32 %s3471_s22, 4  ;;  %s2157_s30 = int_to_ptr.hbm [resolvable:$true] %s2156_s30 }
 0xd6e   :  { %v1865_v57 = vpop.f32.mrf.mxu3 }
 0xd86   :  { %v1802_v55 = vpop.f32.mrf.mxu1 }
 0xd87   :  { %1873 = vrot.lane.b32.xlu1 %v1802_v55, %s2721_s5 }
 0xd8f   :  { %1877 = vrot.lane.b32.xlu1 %v1865_v57, %s2739_s24 }
 0xda3   :  { %v1611_v59 = vpop.permute.xlu2 %1610 }
 0xda4   :  { %v1618_v61 = vsel %vm734_vm11, %v1617_v60, %v1611_v59  ;;  %v2271_v59 = vld [vmem:[%s3467_s18 + $0x70] sm:$0xff]  ;;  %v2270_v60 = vld [vmem:[%s3467_s18 + $0x68] sm:$0xff] }
 0xda5   :  { %2068 = vmatpush.msra.mxu2 %v2271_v59 }
 0xda7   :  { %2069 = vmatpush.msra.mxu2 %v2270_v60 }
 0xdcc   :  { %v1615_v62 = vpop.permute.xlu1 %1614 }
 0xdcd   :  { %v1619_v63 = vsel %vm736_vm12, %v1618_v61, %v1615_v62  ;;  %v2269_v61 = vld [vmem:[%s3467_s18 + $0x60] sm:$0xff]  ;;  %v2268_v62 = vld [vmem:[%s3467_s18 + $0x58] sm:$0xff] }
 0xdce   :  { %2257 = vmatmul.msk.f32.vlgmr.msrb.gmra.mxu0 %vm306_vm2, %v1619_v63  ;;  %2070 = vmatpush.msra.mxu2 %v2269_v61  ;;  %v2267_v63 = vld [vmem:[%s3467_s18 + $0x50] sm:$0xff] }
 0xdd0   :  { %2071 = vmatpush.msra.mxu2 %v2268_v62 }
 0xdd2   :  { %2072 = vmatpush.msra.mxu2 %v2267_v63 }
 0xdd4   :  { %v1870_v1 = vpop.permute.xlu0 %1869 }
 0xdd5   :  { %v1880_v2 = vsel %vm471_vm10, %v1675_v34, %v1870_v1  ;;  %v2265_v1 = vld [vmem:[%s3467_s18 + $0x40] sm:$0xff] }
 0xdf9   :  { %v1874_v0 = vpop.permute.xlu1 %1873 }
 0xdfa   :  { %v1881_v4 = vsel %vm734_vm11, %v1880_v2, %v1874_v0  ;;  %v2266_v0 = vld [vmem:[%s3467_s18 + $0x48] sm:$0xff]  ;;  %s2740_s18 = smov [#allocation20]  }
 0xdfb   :  { %2073 = vmatpush.msra.mxu2 %v2266_v0  ;;  %v2320_v2 = vld [vmem:[#allocation14 + $0x1] ss:$0 sm:$0xff]  ;;  %v2322_v0 = vld [vmem:[#allocation17 + $0x1] ss:$0 sm:$0xff]  ;;  %s2154_s11 = sshll.u32 %s2740_s18, 4  ;;  %s2155_s11 = int_to_ptr.vmem [resolvable:$true] %s2154_s11 }
 0xdfd   :  { %2074 = vmatpush.msra.mxu2 %v2265_v1 }
 0xe01   :  { %v1878_v5 = vpop.permute.xlu1 %1877 }
 0xe02   :  { %v1882_v6 = vsel %vm736_vm12, %v1881_v4, %v1878_v5 }
 0xe03   :  { %2258 = vmatmul.msk.f32.gmra.mxu0 %vm306_vm2, %v1882_v6 }
 0xe4b   :  { %v1916_v8 = vpop.f32.mrf.mxu0 }
 0xe4c   :  { %v1917_v46 = vadd.f32 %v2317_v7, %v1916_v8 }
 0xe4e   :  { %v1922_v9 = vadd.f32 %v1917_v46, %v3258_v43 }
 0xe50   :  { %v1928_v10 = vsel %vm306_vm2, %v1922_v9, 0.0 }
 0xe51   :  { %1929 = vadd.xlane.f32.xlu2 %v1928_v10 }
 0xe80   :  { %v1919_v12 = vpop.f32.mrf.mxu0 }
 0xe81   :  { %v1920_v13 = vadd.f32 %v2317_v7, %v1919_v12 }
 0xe83   :  { %v1923_v14 = vadd.f32 %v1920_v13, %v3281_v3  ;;  %v2262_v3 = vld [vmem:[%s3465_s16 + $0x38] sm:$0xff] }
 0xe84   :  { %2010 = vmatpush.msrb.mxu1 %v2262_v3  ;;  %v2321_v3 = vld [vmem:[#allocation16 + $0x1] ss:$0 sm:$0xff] }
 0xe85   :  { %v1931_v15 = vsel %vm306_vm2, %v1923_v14, 0.0 }
 0xe86   :  { %1932 = vadd.xlane.f32.xlu1 %v1931_v15  ;;  %2011 = vmatpush.msrb.mxu1 %v2261_v27 }
 0xe88   :  { %2012 = vmatpush.msrb.mxu1 %v2260_v28 }
 0xe8a   :  { %2013 = vmatpush.msrb.mxu1 %v2259_v29 }
 0xec4   :  { %v1930_v16 = vpop.xlane.xlu2 %1929 }
 0xec5   :  { %v1934_v17 = vmul.f32 %v1930_v16, %v2975_v38 }
 0xec7   :  { %v1936_v18 = vsub.f32 %v1922_v9, %v1934_v17 }
 0xec9   :  { %v1938_v20 = vmul.f32 %v1936_v18, %v1936_v18 }
 0xecb   :  { %v1940_v21 = vsel %vm306_vm2, %v1938_v20, 0.0 }
 0xecc   :  { %1941 = vadd.xlane.f32.xlu0 %v1940_v21 }
 0xef9   :  { %v1933_v22 = vpop.xlane.xlu1 %1932 }
 0xefa   :  { %v1935_v43 = vmul.f32 %v1933_v22, %v2975_v38 }
 0xefc   :  { %v1937_v23 = vsub.f32 %v1923_v14, %v1935_v43 }
 0xefe   :  { %v1939_v51 = vmul.f32 %v1937_v23, %v1937_v23 }
 0xf00   :  { %v1943_v26 = vsel %vm306_vm2, %v1939_v51, 0.0 }
 0xf01   :  { %1944 = vadd.xlane.f32.xlu2 %v1943_v26 }
 0xf3f   :  { %v1942_v25 = vpop.xlane.xlu0 %1941 }
 0xf40   :  { %v1946_v30 = vmul.f32 %v1942_v25, %v2975_v38 }
 0xf42   :  { %v1948_v32 = vadd.f32 1e-12, %v1946_v30 }
 0xf44   :  { %2406 = vrsqrt.f32 %v1948_v32  ;;  %vm1956_vm11 = vweird.f32 %v1948_v32 }
 0xf4a   :  { %v2407_v33 = vpop.eup %2406 }
 0xf4b   :  { %v1951_v36 = vmul.f32 %v2407_v33, %v1948_v32  ;;  %vm1957_vm10 = vweird.f32 %v2407_v33 }
 0xf4c   :  { %vm1958_vm12 = vmor %vm1956_vm11, %vm1957_vm10 }
 0xf4d   :  { %v1952_v37 = vmul.f32 %v2407_v33, %v1951_v36 }
 0xf4f   :  { %v1953_v39 = vmul.f32 0.5, %v1952_v37 }
 0xf51   :  { %v1954_v11 = vsub.f32 1.5, %v1953_v39 }
 0xf53   :  { %v1955_v40 = vmul.f32 %v2407_v33, %v1954_v11 }
 0xf55   :  { %v1959_v42 = vsel %vm1958_vm12, %v2407_v33, %v1955_v40 }
 0xf56   :  { %v1970_v44 = vmul.f32 %v1959_v42, %v1936_v18 }
 0xf58   :  { %v1975_v35 = vmul.f32 %v2318_v41, %v1970_v44 }
 0xf5a   :  { %v3405_v47 = vadd.f32 %v2319_v45, %v1975_v35 }
 0xf5c   :  { %2263 = vmatmul.msk.f32.vlgmr.msrb.gmra.mxu1 %vm306_vm2, %v3405_v47 }
 0xf74   :  { %v1945_v31 = vpop.xlane.xlu2 %1944 }
 0xf75   :  { %v1947_v48 = vmul.f32 %v1945_v31, %v2975_v38 }
 0xf77   :  { %v1949_v49 = vadd.f32 1e-12, %v1947_v48 }
 0xf79   :  { %2408 = vrsqrt.f32 %v1949_v49  ;;  %vm1966_vm15 = vweird.f32 %v1949_v49 }
 0xf7f   :  { %v2409_v50 = vpop.eup %2408 }
 0xf80   :  { %v1961_v19 = vmul.f32 %v2409_v50, %v1949_v49  ;;  %vm1967_vm14 = vweird.f32 %v2409_v50 }
 0xf81   :  { %vm1968_vm1 = vmor %vm1966_vm15, %vm1967_vm14 }
 0xf82   :  { %v1962_v52 = vmul.f32 %v2409_v50, %v1961_v19 }
 0xf84   :  { %v1963_v34 = vmul.f32 0.5, %v1962_v52 }
 0xf86   :  { %v1964_v53 = vsub.f32 1.5, %v1963_v34 }
 0xf88   :  { %v1965_v54 = vmul.f32 %v2409_v50, %v1964_v53 }
 0xf8a   :  { %v1969_v55 = vsel %vm1968_vm1, %v2409_v50, %v1965_v54 }
 0xf8b   :  { %v1971_v56 = vmul.f32 %v1969_v55, %v1937_v23 }
 0xf8d   :  { %v1976_v57 = vmul.f32 %v2318_v41, %v1971_v56 }
 0xf8f   :  { %v1981_v24 = vadd.f32 %v2319_v45, %v1976_v57 }
 0xf91   :  { %2264 = vmatmul.msk.f32.gmra.mxu1 %vm306_vm2, %v1981_v24 }
 0xfd9   :  { %v2015_v4 = vpop.f32.mrf.mxu1 }
 0xfda   :  { %v2016_v5 = vadd.f32 %v2320_v2, %v2015_v4 }
 0xfdc   :  { %v2021_v6 = vmul.f32 %v2016_v5, %v2016_v5  ;;  %v2025_v12 = vmul.f32 0.5, %v2016_v5 }
 0xfde   :  { %v2023_v7 = vmul.f32 %v2021_v6, %v2016_v5  ;;  %v2323_v6 = vld [vmem:[#allocation19 + $0x1] ss:$0 sm:$0xff] }
 0xfe0   :  { %v2027_v8 = vmul.f32 0.044715, %v2023_v7 }
 0xfe2   :  { %v2029_v46 = vadd.f32 %v2027_v8, %v2016_v5 }
 0xfe4   :  { %v2031_v9 = vmul.f32 0.7978846, %v2029_v46 }
 0xfe6   :  { %2410 = vtanh.f32 %v2031_v9 }
 0xfec   :  { %v2411_v10 = vpop.eup %2410 }
 0xfed   :  { %v2035_v13 = vadd.f32 1.0, %v2411_v10 }
 0xfef   :  { %v2037_v14 = vmul.f32 %v2035_v13, %v2025_v12 }
 0xff1   :  { %2273 = vmatmul.msk.f32.vlgmr.msra.gmra.mxu2 %vm1164_vm0, %v2037_v14 }
0x100e   :  { %v2018_v15 = vpop.f32.mrf.mxu1 }
0x100f   :  { %v2019_v16 = vadd.f32 %v2320_v2, %v2018_v15 }
0x1011   :  { %v2022_v17 = vmul.f32 %v2019_v16, %v2019_v16  ;;  %v2026_v23 = vmul.f32 0.5, %v2019_v16 }
0x1013   :  { %v2024_v18 = vmul.f32 %v2022_v17, %v2019_v16 }
0x1015   :  { %v2028_v20 = vmul.f32 0.044715, %v2024_v18 }
0x1017   :  { %v2030_v21 = vadd.f32 %v2028_v20, %v2019_v16 }
0x1019   :  { %v2032_v22 = vmul.f32 0.7978846, %v2030_v21 }
0x101b   :  { %2412 = vtanh.f32 %v2032_v22 }
0x1021   :  { %v2413_v43 = vpop.eup %2412 }
0x1022   :  { %v2036_v51 = vadd.f32 1.0, %v2413_v43 }
0x1024   :  { %v2038_v26 = vmul.f32 %v2036_v51, %v2026_v23 }
0x1026   :  { %2274 = vmatmul.msk.f32.gmra.mxu2 %vm1164_vm0, %v2038_v26 }
0x1074   :  { %v2076_v27 = vpop.f32.mrf.mxu2 }
0x1075   :  { %v2077_v28 = vadd.f32 %v2321_v3, %v2076_v27 }
0x1077   :  { %v2082_v29 = vadd.f32 %v2077_v28, %v3405_v47 }
0x1079   :  { %v2088_v25 = vsel %vm306_vm2, %v2082_v29, 0.0 }
0x107a   :  { %2089 = vadd.xlane.f32.xlu1 %v2088_v25 }
0x10a9   :  { %v2079_v30 = vpop.f32.mrf.mxu2 }
0x10aa   :  { %v2080_v32 = vadd.f32 %v2321_v3, %v2079_v30 }
0x10ac   :  { %v2083_v33 = vadd.f32 %v2080_v32, %v1981_v24 }
0x10ae   :  { %v2091_v36 = vsel %vm306_vm2, %v2083_v33, 0.0 }
0x10af   :  { %2092 = vadd.xlane.f32.xlu2 %v2091_v36 }
0x10ed   :  { %v2090_v37 = vpop.xlane.xlu1 %2089 }
0x10ee   :  { %v2094_v39 = vmul.f32 %v2090_v37, %v2975_v38 }
0x10f0   :  { %v2096_v11 = vsub.f32 %v2082_v29, %v2094_v39 }
0x10f2   :  { %v2098_v40 = vmul.f32 %v2096_v11, %v2096_v11 }
0x10f4   :  { %v2100_v41 = vsel %vm306_vm2, %v2098_v40, 0.0 }
0x10f5   :  { %2101 = vadd.xlane.f32.xlu0 %v2100_v41 }
0x1122   :  { %v2093_v42 = vpop.xlane.xlu2 %2092 }
0x1123   :  { %v2095_v44 = vmul.f32 %v2093_v42, %v2975_v38 }
0x1125   :  { %v2097_v45 = vsub.f32 %v2083_v33, %v2095_v44 }
0x1127   :  { %v2099_v35 = vmul.f32 %v2097_v45, %v2097_v45 }
0x1129   :  { %v2103_v47 = vsel %vm306_vm2, %v2099_v35, 0.0 }
0x112a   :  { %2104 = vadd.xlane.f32.xlu2 %v2103_v47 }
0x1168   :  { %v2102_v31 = vpop.xlane.xlu0 %2101 }
0x1169   :  { %v2106_v48 = vmul.f32 %v2102_v31, %v2975_v38 }
0x116b   :  { %v2108_v49 = vadd.f32 1e-12, %v2106_v48 }
0x116d   :  { %2414 = vrsqrt.f32 %v2108_v49  ;;  %vm2116_vm0 = vweird.f32 %v2108_v49 }
0x1173   :  { %v2415_v50 = vpop.eup %2414 }
0x1174   :  { %v2111_v19 = vmul.f32 %v2415_v50, %v2108_v49  ;;  %vm2117_vm2 = vweird.f32 %v2415_v50 }
0x1175   :  { %vm2118_vm3 = vmor %vm2116_vm0, %vm2117_vm2 }
0x1176   :  { %v2112_v53 = vmul.f32 %v2415_v50, %v2111_v19 }
0x1178   :  { %v2113_v55 = vmul.f32 0.5, %v2112_v53 }
0x117a   :  { %v2114_v56 = vsub.f32 1.5, %v2113_v55 }
0x117c   :  { %v2115_v58 = vmul.f32 %v2415_v50, %v2114_v56 }
0x117e   :  { %v2119_v61 = vsel %vm2118_vm3, %v2415_v50, %v2115_v58 }
0x119d   :  { %v2105_v52 = vpop.xlane.xlu2 %2104 }
0x119e   :  { %v2107_v34 = vmul.f32 %v2105_v52, %v2975_v38  ;;  %v2130_v38 = vmul.f32 %v2119_v61, %v2096_v11 }
0x11a0   :  { %v2109_v54 = vadd.f32 1e-12, %v2107_v34  ;;  %v2135_v4 = vmul.f32 %v2322_v0, %v2130_v38 }
0x11a2   :  { %2416 = vrsqrt.f32 %v2109_v54  ;;  %vm2126_vm5 = vweird.f32 %v2109_v54  ;;  %v2140_v8 = vadd.f32 %v2323_v6, %v2135_v4 }
0x11a8   :  { %v2417_v57 = vpop.eup %2416 }
0x11a9   :  { %v2121_v24 = vmul.f32 %v2417_v57, %v2109_v54  ;;  %vm2127_vm4 = vweird.f32 %v2417_v57 }
0x11aa   :  { %vm2128_vm6 = vmor %vm2126_vm5, %vm2127_vm4 }
0x11ab   :  { %v2122_v59 = vmul.f32 %v2417_v57, %v2121_v24 }
0x11ad   :  { %v2123_v60 = vmul.f32 0.5, %v2122_v59 }
0x11af   :  { %v2124_v62 = vsub.f32 1.5, %v2123_v60 }
0x11b1   :  { %v2125_v63 = vmul.f32 %v2417_v57, %v2124_v62 }
0x11b3   :  { %v2129_v1 = vsel %vm2128_vm6, %v2417_v57, %v2125_v63 }
0x11b4   :  { %v2131_v2 = vmul.f32 %v2129_v1, %v2097_v45 }
0x11b6   :  { %v2136_v5 = vmul.f32 %v2322_v0, %v2131_v2 }
0x11b8   :  { %v2141_v7 = vadd.f32 %v2323_v6, %v2136_v5 }
0x11ba   :  { %v2143_v46 = vrot.slane %v2141_v7, 7 }
0x11bc   :  { %v2146_v9 = vsel %vm2145_vm7, %v2140_v8, %v2143_v46 }
0x11bd   :  { %2148 = vst.msk [vmem:[#allocation20] sm:$0x3] %vm2147_vm8, %v2146_v9 }
0x11be   :  { %2159 = dma.vmem_to_hbm [thread:$0]  %s2155_s11, 32, %s2157_s30, [#allocation4]  }
0x11bf   :  { %2718 = dma.done.wait [#allocation4], 32  }
0x11c0   :  { %2719 = vsyncadd [#allocation4], 4294967264 }
0x11c1   :  { %2164 = vsyncpa [#allocation3], 1 }
0x11c2   :  { %2165 = vsyncpa [#allocation6], 1 }
0x11c3   :  { %2166 = vsyncpa [#allocation9], 1 }
0x11c4   :  { %2167 = vsyncpa [#allocation12], 1 }
0x11c5   :  { %2168 = vsyncpa [#allocation15], 1 }
0x11c6   :  { %2169 = vsyncpa [#allocation18], 1 }
0x11c7   :  { %2170 = vsyncpa [#allocation4], 1 }

</bundles_post_ra>
